<compile_context>
chip_gen: v7x
topology: tpu7x:2x2x1
jax: 0.10.0
libtpu: 0.0.40
codegen_flags: <defaults>
</compile_context>

<pallas_src>
import jax
import jax.numpy as jnp
from jax.experimental import pallas as pl
from jax.experimental.pallas import tpu as pltpu

# ---- hyper-parameters consistent with PatchSmoothingModule (small config) ----
EMBED_DIM   = 32                      # embed_dim
OUT_CHANS   = 3                       # out_chans
INPUT_SIZE  = 32                      # input_size
OUTPUT_SIZE = 48                      # output_size
PATCH       = 8                       # patch_size == stride of transposed conv
OVERLAP     = 4                       # overlap_size
KSIZE       = PATCH + 2 * OVERLAP     # 16
PAD         = OVERLAP                 # conv_transpose padding (rows/cols cropped)
HP = WP     = OUTPUT_SIZE // PATCH    # 6 patches per side
NTOK        = HP * WP                 # 36 tokens
P_CROP      = (OUTPUT_SIZE - INPUT_SIZE) // 2        # 8  (gt_inner overwrite margin)
P_MASK      = P_CROP // PATCH                        # 1  (mask ring width in patches)
BATCH       = 2

HW     = PATCH * OUTPUT_SIZE          # 384  : one 8-row output tile, flat lanes
HALF   = PAD * OUTPUT_SIZE            # 192  : one 4-row edge quarter, flat lanes
CHW    = OUT_CHANS * HW               # 1152 : all channels' mid rows
NCOLS  = 2 * CHW                      # 2304 : total matmul output lanes

assert KSIZE == 2 * PATCH, "tile decomposition assumes kernel_size == 2 * stride"


# -----------------------------------------------------------------------------
# Fused kernel (one grid step == one image):
#   MXU matmul -> vectorized height overlap-add -> bias / mask / interior blend
# -----------------------------------------------------------------------------
def _psm_fused_kernel(x_ref, ws_ref, bias_ref, mw_ref, inner_ref, gt_ref,
                      o_ref, acc_ref):
    # --- 1) single MXU pass: (HP, WP*E) @ (WP*E, 2304), bf16 in, f32 acc ------
    xb = x_ref[0].astype(jnp.bfloat16)                              # (6, 192)
    rb = jnp.dot(xb, ws_ref[...], preferred_element_type=jnp.float32)
    # rb lanes: [0, CHW)      = mid kernel rows (ki 4..11), order (c, r, j)
    #           [CHW, 2*CHW)  = per channel [bottom ki 12..15 | top ki 0..3]

    # --- 2) height overlap-add (row-crop already folded into the weight) -----
    # output tile t (8 rows) = mid(token t) + bottom(token t-1) + top(token t+1)
    acc_ref[...] = rb[:, :CHW]                                      # (6, 1152)
    for c in range(OUT_CHANS):
        lo = c * HW
        eo = CHW + c * HW
        # bottom quarter of token-row t -> rows 0..3 of tile t+1
        acc_ref[1:HP, lo:lo + HALF] = (
            acc_ref[1:HP, lo:lo + HALF] + rb[0:HP - 1, eo:eo + HALF])
        # top quarter of token-row t -> rows 4..7 of tile t-1
        acc_ref[0:HP - 1, lo + HALF:lo + HW] = (
            acc_ref[0:HP - 1, lo + HALF:lo + HW] + rb[1:HP, eo + HALF:eo + HW])

    # --- 3) bias + mask-weight + gt interior overwrite (lane-aligned slices) --
    inner = inner_ref[...] != 0.0                                   # (6, 384)
    for c in range(OUT_CHANS):
        conv_c = acc_ref[:, c * HW:(c + 1) * HW]                    # (6, 384)
        y = (conv_c + bias_ref[c, :, :]) * mw_ref[c, :, :]
        o_ref[0, c, :, :] = jnp.where(inner, gt_ref[0, c, :, :], y)


@jax.jit
def psm_forward(x, gt_inner, ws, bias_t, mw_t, inner_t):
    # Only free, contiguous reshapes on the wrapper side.
    x3 = x.reshape(BATCH, HP, WP * EMBED_DIM)                       # (2, 6, 192)
    gt_t = gt_inner.reshape(BATCH, OUT_CHANS, HP, HW)               # (2, 3, 6, 384)
    out = pl.pallas_call(
        _psm_fused_kernel,
        out_shape=jax.ShapeDtypeStruct((BATCH, OUT_CHANS, HP, HW), jnp.float32),
        grid=(BATCH,),
        in_specs=[
            pl.BlockSpec((1, HP, WP * EMBED_DIM), lambda b: (b, 0, 0)),
            pl.BlockSpec((WP * EMBED_DIM, NCOLS), lambda b: (0, 0)),
            pl.BlockSpec((OUT_CHANS, HP, HW), lambda b: (0, 0, 0)),
            pl.BlockSpec((OUT_CHANS, HP, HW), lambda b: (0, 0, 0)),
            pl.BlockSpec((HP, HW), lambda b: (0, 0)),
            pl.BlockSpec((1, OUT_CHANS, HP, HW), lambda b: (b, 0, 0, 0)),
        ],
        out_specs=pl.BlockSpec((1, OUT_CHANS, HP, HW), lambda b: (b, 0, 0, 0)),
        scratch_shapes=[pltpu.VMEM((HP, CHW), jnp.float32)],
        compiler_params=pltpu.CompilerParams(
            dimension_semantics=("parallel",)),          # v7x: one image per core
    )(x3, ws, bias_t, mw_t, inner_t, gt_t)
    return out.reshape(BATCH, OUT_CHANS, OUTPUT_SIZE, OUTPUT_SIZE)


# -----------------------------------------------------------------------------
# Parameter / buffer setup (plain JAX, setup-time only — mirrors __init__)
# -----------------------------------------------------------------------------
def conv_transpose_nchw(x, w, stride, padding):
    """PyTorch F.conv_transpose2d semantics: x (N,Ci,H,W), w (Ci,Co,K,K)."""
    n, ci, hin, win = x.shape
    _, co, k, _ = w.shape
    hfull = (hin - 1) * stride + k
    wfull = (win - 1) * stride + k
    out = jnp.zeros((n, co, hfull, wfull), jnp.float32)
    for i in range(hin):
        for j in range(win):
            blk = jnp.einsum('nc,cokl->nokl', x[:, :, i, j], w)
            out = out.at[:, :, i * stride:i * stride + k,
                               j * stride:j * stride + k].add(blk)
    return out[:, :, padding:hfull - padding, padding:wfull - padding]


def build_params(key):
    kw, kb = jax.random.split(key)
    # nn.ConvTranspose2d(embed_dim, out_chans) weight: (Cin=E, Cout=C, K, K)
    proj_w = 0.02 * jax.random.normal(kw, (EMBED_DIM, OUT_CHANS, KSIZE, KSIZE),
                                      jnp.float32)
    # module inits this bias to 0; use small nonzero values so the path is exercised
    bias_p = 0.01 * jax.random.normal(kb, (1, OUT_CHANS, KSIZE, KSIZE), jnp.float32)

    mask = jnp.ones((1, 1, HP, WP), jnp.float32)
    mask = mask.at[:, :, P_MASK:-P_MASK, P_MASK:-P_MASK].set(0.0)

    mw = conv_transpose_nchw(
        mask, jnp.ones((1, OUT_CHANS, KSIZE, KSIZE), jnp.float32), PATCH, PAD)
    mask_weight = jnp.where(mw != 0, 1.0 / jnp.where(mw != 0, mw, 1.0), 0.0)
    bias_map = conv_transpose_nchw(mask, bias_p, PATCH, PAD)        # (1, C, 48, 48)

    # Width-scattered weight W[(w,e), (c, ki, col)] = proj_w[e,c,ki,kj]
    # where col = 8*w + kj - PAD (already cropped to [0, 48)).
    kj = jnp.arange(KSIZE)
    col = jnp.arange(WP)[:, None] * PATCH + kj[None, :] - PAD           # (WP, K)
    valid = ((col >= 0) & (col < OUTPUT_SIZE)).astype(jnp.float32)
    scatter = (jax.nn.one_hot(jnp.clip(col, 0, OUTPUT_SIZE - 1), OUTPUT_SIZE,
                              dtype=jnp.float32) * valid[..., None])    # (WP, K, 48)
    ws5 = jnp.einsum('ecij,wjl->wecil', proj_w, scatter)                # (WP,E,C,K,48)

    # Re-order the kernel-row axis so the matmul output is tile-layout ready:
    #   [ mid rows ki=4..11 (-> tile t)        : lanes (c, r, j), 1152 wide ]
    #   [ per channel: bottom ki=12..15 (-> tile t+1, rows 0..3)
    #                  top    ki= 0.. 3 (-> tile t-1, rows 4..7), 1152 wide ]
    mid = ws5[:, :, :, PAD:PAD + PATCH, :]                              # (.,.,C,8,48)
    bot = ws5[:, :, :, PAD + PATCH:, :]                                 # (.,.,C,4,48)
    top = ws5[:, :, :, :PAD, :]                                         # (.,.,C,4,48)
    edge = jnp.concatenate([bot, top], axis=3)                          # (.,.,C,8,48)
    ws = jnp.concatenate(
        [mid.reshape(WP, EMBED_DIM, CHW), edge.reshape(WP, EMBED_DIM, CHW)],
        axis=2).reshape(WP * EMBED_DIM, NCOLS).astype(jnp.bfloat16)     # (192, 2304)

    # De-duplicated epilogue constants in the (C, tile, r*48+j) layout.
    bias_t = bias_map.reshape(OUT_CHANS, HP, HW)                        # (3, 6, 384)
    mw_t = mask_weight.reshape(OUT_CHANS, HP, HW)                       # (3, 6, 384)
    inner = jnp.zeros((OUTPUT_SIZE, OUTPUT_SIZE), jnp.float32)
    inner = inner.at[P_CROP:-P_CROP, P_CROP:-P_CROP].set(1.0)
    inner_t = inner.reshape(HP, HW)                                     # (6, 384)
    return proj_w, ws, bias_t, mw_t, inner_t, bias_map, mask_weight


# pure-JAX reference (mirrors the PyTorch forward exactly, f32 throughout)
def psm_forward_ref(x, gt_inner, proj_w, bias_map, mask_weight):
    B, N, E = x.shape
    x_img = jnp.transpose(x, (0, 2, 1)).reshape(B, E, HP, WP)  # 'b (h w) c -> b c h w'
    conv = conv_transpose_nchw(x_img, proj_w, PATCH, PAD)
    y = (conv + bias_map) * mask_weight
    p = P_CROP
    return y.at[:, :, p:-p, p:-p].set(gt_inner[:, :, p:-p, p:-p])


if __name__ == "__main__":
    key = jax.random.PRNGKey(0)
    kx, kg, kp = jax.random.split(key, 3)
    x = jax.random.normal(kx, (BATCH, NTOK, EMBED_DIM), jnp.float32)
    gt_inner = jax.random.normal(
        kg, (BATCH, OUT_CHANS, OUTPUT_SIZE, OUTPUT_SIZE), jnp.float32)

    proj_w, ws, bias_t, mw_t, inner_t, bias_map, mask_weight = build_params(kp)

    out = psm_forward(x, gt_inner, ws, bias_t, mw_t, inner_t)
    out = jax.block_until_ready(out)

    ref = psm_forward_ref(x, gt_inner, proj_w, bias_map, mask_weight)
    assert out.shape == (BATCH, OUT_CHANS, OUTPUT_SIZE, OUTPUT_SIZE)
    # tolerance relaxed vs. the all-f32 version: matmul inputs are bf16
    # (K=192 accumulated in f32 on the MXU), interior is copied exactly from gt.
    err = float(jnp.max(jnp.abs(out - ref)))
    assert jnp.allclose(out, ref, rtol=2e-2, atol=2e-2), err
    print("KERNEL_OK")
</pallas_src>

<mosaic_0001>
module attributes {stable_mosaic.version = 11 : i64} {
  func.func @_psm_fused_kernel(%arg0: i32, %arg1: memref<1x6x192xf32, #tpu.memory_space<vmem>>, %arg2: memref<192x2304xbf16, #tpu.memory_space<vmem>>, %arg3: memref<3x6x384xf32, #tpu.memory_space<vmem>>, %arg4: memref<3x6x384xf32, #tpu.memory_space<vmem>>, %arg5: memref<6x384xf32, #tpu.memory_space<vmem>>, %arg6: memref<1x3x6x384xf32, #tpu.memory_space<vmem>>, %arg7: memref<1x3x6x384xf32, #tpu.memory_space<vmem>>, %arg8: memref<6x1152xf32, #tpu.memory_space<vmem>>) attributes {dimension_semantics = [#tpu.dimension_semantics<parallel>], iteration_bounds = array<i64: 2>, scalar_prefetch = 0 : i64, scratch_operands = 1 : i64, tpu.core_type = #tpu.core_type<tc>, window_params = [{transform_indices = @transform_0, window_bounds = array<i64: 1, 6, 192>}, {pipeline_mode = #tpu.pipeline_mode<synchronous>, transform_indices = @transform_1, window_bounds = array<i64: 192, 2304>}, {pipeline_mode = #tpu.pipeline_mode<synchronous>, transform_indices = @transform_2, window_bounds = array<i64: 3, 6, 384>}, {pipeline_mode = #tpu.pipeline_mode<synchronous>, transform_indices = @transform_3, window_bounds = array<i64: 3, 6, 384>}, {pipeline_mode = #tpu.pipeline_mode<synchronous>, transform_indices = @transform_4, window_bounds = array<i64: 6, 384>}, {transform_indices = @transform_5, window_bounds = array<i64: 1, 3, 6, 384>}, {transform_indices = @transform_6, window_bounds = array<i64: 1, 3, 6, 384>}]} {
    %c0 = arith.constant 0 : index
    %c0_0 = arith.constant 0 : index
    %c0_1 = arith.constant 0 : index
    %0 = vector.load %arg1[%c0, %c0_0, %c0_1] : memref<1x6x192xf32, #tpu.memory_space<vmem>>, vector<1x6x192xf32>
    %1 = vector.shape_cast %0 : vector<1x6x192xf32> to vector<6x192xf32>
    %2 = arith.truncf %1 : vector<6x192xf32> to vector<6x192xbf16>
    %c0_2 = arith.constant 0 : index
    %c0_3 = arith.constant 0 : index
    %3 = vector.load %arg2[%c0_2, %c0_3] : memref<192x2304xbf16, #tpu.memory_space<vmem>>, vector<192x2304xbf16>
    %cst = arith.constant dense<0.000000e+00> : vector<6x2304xf32>
    %4 = tpu.matmul %2, %3, %cst {dimension_numbers = #tpu.dot_dimension_numbers<[1], [0], [0], [1], [0, 0, 1, 1], [], []>} : vector<6x192xbf16>, vector<192x2304xbf16>, vector<6x2304xf32> -> vector<6x2304xf32>
    %5 = vector.extract_strided_slice %4 {offsets = [0, 0], sizes = [6, 1152], strides = [1, 1]} : vector<6x2304xf32> to vector<6x1152xf32>
    %c0_4 = arith.constant 0 : index
    %c0_5 = arith.constant 0 : index
    %6 = vector.load %arg8[%c0_4, %c0_5] : memref<6x1152xf32, #tpu.memory_space<vmem>>, vector<6x1152xf32>
    tpu.vector_store %arg8[%c0_4, %c0_5], %5 {strides = array<i32>} : memref<6x1152xf32, #tpu.memory_space<vmem>>, vector<6x1152xf32>,
    %c1 = arith.constant 1 : index
    %c0_6 = arith.constant 0 : index
    %7 = vector.load %arg8[%c1, %c0_6] : memref<6x1152xf32, #tpu.memory_space<vmem>>, vector<5x192xf32>
    %8 = vector.extract_strided_slice %4 {offsets = [0, 1152], sizes = [5, 192], strides = [1, 1]} : vector<6x2304xf32> to vector<5x192xf32>
    %9 = arith.addf %7, %8 : vector<5x192xf32>
    %c1_7 = arith.constant 1 : index
    %c0_8 = arith.constant 0 : index
    %10 = vector.load %arg8[%c1_7, %c0_8] : memref<6x1152xf32, #tpu.memory_space<vmem>>, vector<5x192xf32>
    tpu.vector_store %arg8[%c1_7, %c0_8], %9 {strides = array<i32>} : memref<6x1152xf32, #tpu.memory_space<vmem>>, vector<5x192xf32>,
    %c0_9 = arith.constant 0 : index
    %c192 = arith.constant 192 : index
    %11 = vector.load %arg8[%c0_9, %c192] : memref<6x1152xf32, #tpu.memory_space<vmem>>, vector<5x192xf32>
    %12 = vector.extract_strided_slice %4 {offsets = [1, 1344], sizes = [5, 192], strides = [1, 1]} : vector<6x2304xf32> to vector<5x192xf32>
    %13 = arith.addf %11, %12 : vector<5x192xf32>
    %c0_10 = arith.constant 0 : index
    %c192_11 = arith.constant 192 : index
    %14 = vector.load %arg8[%c0_10, %c192_11] : memref<6x1152xf32, #tpu.memory_space<vmem>>, vector<5x192xf32>
    tpu.vector_store %arg8[%c0_10, %c192_11], %13 {strides = array<i32>} : memref<6x1152xf32, #tpu.memory_space<vmem>>, vector<5x192xf32>,
    %c1_12 = arith.constant 1 : index
    %c384 = arith.constant 384 : index
    %15 = vector.load %arg8[%c1_12, %c384] : memref<6x1152xf32, #tpu.memory_space<vmem>>, vector<5x192xf32>
    %16 = vector.extract_strided_slice %4 {offsets = [0, 1536], sizes = [5, 192], strides = [1, 1]} : vector<6x2304xf32> to vector<5x192xf32>
    %17 = arith.addf %15, %16 : vector<5x192xf32>
    %c1_13 = arith.constant 1 : index
    %c384_14 = arith.constant 384 : index
    %18 = vector.load %arg8[%c1_13, %c384_14] : memref<6x1152xf32, #tpu.memory_space<vmem>>, vector<5x192xf32>
    tpu.vector_store %arg8[%c1_13, %c384_14], %17 {strides = array<i32>} : memref<6x1152xf32, #tpu.memory_space<vmem>>, vector<5x192xf32>,
    %c0_15 = arith.constant 0 : index
    %c576 = arith.constant 576 : index
    %19 = vector.load %arg8[%c0_15, %c576] : memref<6x1152xf32, #tpu.memory_space<vmem>>, vector<5x192xf32>
    %20 = vector.extract_strided_slice %4 {offsets = [1, 1728], sizes = [5, 192], strides = [1, 1]} : vector<6x2304xf32> to vector<5x192xf32>
    %21 = arith.addf %19, %20 : vector<5x192xf32>
    %c0_16 = arith.constant 0 : index
    %c576_17 = arith.constant 576 : index
    %22 = vector.load %arg8[%c0_16, %c576_17] : memref<6x1152xf32, #tpu.memory_space<vmem>>, vector<5x192xf32>
    tpu.vector_store %arg8[%c0_16, %c576_17], %21 {strides = array<i32>} : memref<6x1152xf32, #tpu.memory_space<vmem>>, vector<5x192xf32>,
    %c1_18 = arith.constant 1 : index
    %c768 = arith.constant 768 : index
    %23 = vector.load %arg8[%c1_18, %c768] : memref<6x1152xf32, #tpu.memory_space<vmem>>, vector<5x192xf32>
    %24 = vector.extract_strided_slice %4 {offsets = [0, 1920], sizes = [5, 192], strides = [1, 1]} : vector<6x2304xf32> to vector<5x192xf32>
    %25 = arith.addf %23, %24 : vector<5x192xf32>
    %c1_19 = arith.constant 1 : index
    %c768_20 = arith.constant 768 : index
    %26 = vector.load %arg8[%c1_19, %c768_20] : memref<6x1152xf32, #tpu.memory_space<vmem>>, vector<5x192xf32>
    tpu.vector_store %arg8[%c1_19, %c768_20], %25 {strides = array<i32>} : memref<6x1152xf32, #tpu.memory_space<vmem>>, vector<5x192xf32>,
    %c0_21 = arith.constant 0 : index
    %c960 = arith.constant 960 : index
    %27 = vector.load %arg8[%c0_21, %c960] : memref<6x1152xf32, #tpu.memory_space<vmem>>, vector<5x192xf32>
    %28 = vector.extract_strided_slice %4 {offsets = [1, 2112], sizes = [5, 192], strides = [1, 1]} : vector<6x2304xf32> to vector<5x192xf32>
    %29 = arith.addf %27, %28 : vector<5x192xf32>
    %c0_22 = arith.constant 0 : index
    %c960_23 = arith.constant 960 : index
    %30 = vector.load %arg8[%c0_22, %c960_23] : memref<6x1152xf32, #tpu.memory_space<vmem>>, vector<5x192xf32>
    tpu.vector_store %arg8[%c0_22, %c960_23], %29 {strides = array<i32>} : memref<6x1152xf32, #tpu.memory_space<vmem>>, vector<5x192xf32>,
    %c0_24 = arith.constant 0 : index
    %c0_25 = arith.constant 0 : index
    %31 = vector.load %arg5[%c0_24, %c0_25] : memref<6x384xf32, #tpu.memory_space<vmem>>, vector<6x384xf32>
    %cst_26 = arith.constant 0.000000e+00 : f32
    %32 = vector.broadcast %cst_26 : f32 to vector<6x384xf32>
    %33 = arith.cmpf one, %31, %32 : vector<6x384xf32>
    %c0_27 = arith.constant 0 : index
    %c0_28 = arith.constant 0 : index
    %34 = vector.load %arg8[%c0_27, %c0_28] : memref<6x1152xf32, #tpu.memory_space<vmem>>, vector<6x384xf32>
    %c0_29 = arith.constant 0 : index
    %c0_30 = arith.constant 0 : index
    %c0_31 = arith.constant 0 : index
    %35 = vector.load %arg3[%c0_29, %c0_30, %c0_31] : memref<3x6x384xf32, #tpu.memory_space<vmem>>, vector<1x6x384xf32>
    %36 = vector.shape_cast %35 : vector<1x6x384xf32> to vector<6x384xf32>
    %37 = arith.addf %34, %36 : vector<6x384xf32>
    %c0_32 = arith.constant 0 : index
    %c0_33 = arith.constant 0 : index
    %c0_34 = arith.constant 0 : index
    %38 = vector.load %arg4[%c0_32, %c0_33, %c0_34] : memref<3x6x384xf32, #tpu.memory_space<vmem>>, vector<1x6x384xf32>
    %39 = vector.shape_cast %38 : vector<1x6x384xf32> to vector<6x384xf32>
    %40 = arith.mulf %37, %39 : vector<6x384xf32>
    %c0_35 = arith.constant 0 : index
    %c0_36 = arith.constant 0 : index
    %c0_37 = arith.constant 0 : index
    %c0_38 = arith.constant 0 : index
    %41 = vector.load %arg6[%c0_35, %c0_36, %c0_37, %c0_38] : memref<1x3x6x384xf32, #tpu.memory_space<vmem>>, vector<1x1x6x384xf32>
    %42 = vector.shape_cast %41 : vector<1x1x6x384xf32> to vector<6x384xf32>
    %43 = arith.select %33, %42, %40 : vector<6x384xi1>, vector<6x384xf32>
    %c0_39 = arith.constant 0 : index
    %c0_40 = arith.constant 0 : index
    %c0_41 = arith.constant 0 : index
    %c0_42 = arith.constant 0 : index
    %44 = vector.load %arg7[%c0_39, %c0_40, %c0_41, %c0_42] : memref<1x3x6x384xf32, #tpu.memory_space<vmem>>, vector<1x1x6x384xf32>
    %45 = vector.shape_cast %44 : vector<1x1x6x384xf32> to vector<6x384xf32>
    %46 = vector.shape_cast %43 : vector<6x384xf32> to vector<1x1x6x384xf32>
    tpu.vector_store %arg7[%c0_39, %c0_40, %c0_41, %c0_42], %46 {strides = array<i32>} : memref<1x3x6x384xf32, #tpu.memory_space<vmem>>, vector<1x1x6x384xf32>,
    %c0_43 = arith.constant 0 : index
    %c384_44 = arith.constant 384 : index
    %47 = vector.load %arg8[%c0_43, %c384_44] : memref<6x1152xf32, #tpu.memory_space<vmem>>, vector<6x384xf32>
    %c1_45 = arith.constant 1 : index
    %c0_46 = arith.constant 0 : index
    %c0_47 = arith.constant 0 : index
    %48 = vector.load %arg3[%c1_45, %c0_46, %c0_47] : memref<3x6x384xf32, #tpu.memory_space<vmem>>, vector<1x6x384xf32>
    %49 = vector.shape_cast %48 : vector<1x6x384xf32> to vector<6x384xf32>
    %50 = arith.addf %47, %49 : vector<6x384xf32>
    %c1_48 = arith.constant 1 : index
    %c0_49 = arith.constant 0 : index
    %c0_50 = arith.constant 0 : index
    %51 = vector.load %arg4[%c1_48, %c0_49, %c0_50] : memref<3x6x384xf32, #tpu.memory_space<vmem>>, vector<1x6x384xf32>
    %52 = vector.shape_cast %51 : vector<1x6x384xf32> to vector<6x384xf32>
    %53 = arith.mulf %50, %52 : vector<6x384xf32>
    %c0_51 = arith.constant 0 : index
    %c1_52 = arith.constant 1 : index
    %c0_53 = arith.constant 0 : index
    %c0_54 = arith.constant 0 : index
    %54 = vector.load %arg6[%c0_51, %c1_52, %c0_53, %c0_54] : memref<1x3x6x384xf32, #tpu.memory_space<vmem>>, vector<1x1x6x384xf32>
    %55 = vector.shape_cast %54 : vector<1x1x6x384xf32> to vector<6x384xf32>
    %56 = arith.select %33, %55, %53 : vector<6x384xi1>, vector<6x384xf32>
    %c0_55 = arith.constant 0 : index
    %c1_56 = arith.constant 1 : index
    %c0_57 = arith.constant 0 : index
    %c0_58 = arith.constant 0 : index
    %57 = vector.load %arg7[%c0_55, %c1_56, %c0_57, %c0_58] : memref<1x3x6x384xf32, #tpu.memory_space<vmem>>, vector<1x1x6x384xf32>
    %58 = vector.shape_cast %57 : vector<1x1x6x384xf32> to vector<6x384xf32>
    %59 = vector.shape_cast %56 : vector<6x384xf32> to vector<1x1x6x384xf32>
    tpu.vector_store %arg7[%c0_55, %c1_56, %c0_57, %c0_58], %59 {strides = array<i32>} : memref<1x3x6x384xf32, #tpu.memory_space<vmem>>, vector<1x1x6x384xf32>,
    %c0_59 = arith.constant 0 : index
    %c768_60 = arith.constant 768 : index
    %60 = vector.load %arg8[%c0_59, %c768_60] : memref<6x1152xf32, #tpu.memory_space<vmem>>, vector<6x384xf32>
    %c2 = arith.constant 2 : index
    %c0_61 = arith.constant 0 : index
    %c0_62 = arith.constant 0 : index
    %61 = vector.load %arg3[%c2, %c0_61, %c0_62] : memref<3x6x384xf32, #tpu.memory_space<vmem>>, vector<1x6x384xf32>
    %62 = vector.shape_cast %61 : vector<1x6x384xf32> to vector<6x384xf32>
    %63 = arith.addf %60, %62 : vector<6x384xf32>
    %c2_63 = arith.constant 2 : index
    %c0_64 = arith.constant 0 : index
    %c0_65 = arith.constant 0 : index
    %64 = vector.load %arg4[%c2_63, %c0_64, %c0_65] : memref<3x6x384xf32, #tpu.memory_space<vmem>>, vector<1x6x384xf32>
    %65 = vector.shape_cast %64 : vector<1x6x384xf32> to vector<6x384xf32>
    %66 = arith.mulf %63, %65 : vector<6x384xf32>
    %c0_66 = arith.constant 0 : index
    %c2_67 = arith.constant 2 : index
    %c0_68 = arith.constant 0 : index
    %c0_69 = arith.constant 0 : index
    %67 = vector.load %arg6[%c0_66, %c2_67, %c0_68, %c0_69] : memref<1x3x6x384xf32, #tpu.memory_space<vmem>>, vector<1x1x6x384xf32>
    %68 = vector.shape_cast %67 : vector<1x1x6x384xf32> to vector<6x384xf32>
    %69 = arith.select %33, %68, %66 : vector<6x384xi1>, vector<6x384xf32>
    %c0_70 = arith.constant 0 : index
    %c2_71 = arith.constant 2 : index
    %c0_72 = arith.constant 0 : index
    %c0_73 = arith.constant 0 : index
    %70 = vector.load %arg7[%c0_70, %c2_71, %c0_72, %c0_73] : memref<1x3x6x384xf32, #tpu.memory_space<vmem>>, vector<1x1x6x384xf32>
    %71 = vector.shape_cast %70 : vector<1x1x6x384xf32> to vector<6x384xf32>
    %72 = vector.shape_cast %69 : vector<6x384xf32> to vector<1x1x6x384xf32>
    tpu.vector_store %arg7[%c0_70, %c2_71, %c0_72, %c0_73], %72 {strides = array<i32>} : memref<1x3x6x384xf32, #tpu.memory_space<vmem>>, vector<1x1x6x384xf32>,
    return
  }
  func.func @transform_0(%arg0: i32) -> (i32, i32, i32) {
    %c0_i32 = arith.constant 0 : i32
    %c0_i32_0 = arith.constant 0 : i32
    %c0_i32_1 = arith.constant 0 : i32
    return %arg0, %c0_i32, %c0_i32_0 : i32, i32, i32
  }
  func.func @transform_1(%arg0: i32) -> (i32, i32) {
    %c0_i32 = arith.constant 0 : i32
    %c0_i32_0 = arith.constant 0 : i32
    %c0_i32_1 = arith.constant 0 : i32
    return %c0_i32, %c0_i32_0 : i32, i32
  }
  func.func @transform_2(%arg0: i32) -> (i32, i32, i32) {
    %c0_i32 = arith.constant 0 : i32
    %c0_i32_0 = arith.constant 0 : i32
    %c0_i32_1 = arith.constant 0 : i32
    %c0_i32_2 = arith.constant 0 : i32
    return %c0_i32, %c0_i32_0, %c0_i32_1 : i32, i32, i32
  }
  func.func @transform_3(%arg0: i32) -> (i32, i32, i32) {
    %c0_i32 = arith.constant 0 : i32
    %c0_i32_0 = arith.constant 0 : i32
    %c0_i32_1 = arith.constant 0 : i32
    %c0_i32_2 = arith.constant 0 : i32
    return %c0_i32, %c0_i32_0, %c0_i32_1 : i32, i32, i32
  }
  func.func @transform_4(%arg0: i32) -> (i32, i32) {
    %c0_i32 = arith.constant 0 : i32
    %c0_i32_0 = arith.constant 0 : i32
    %c0_i32_1 = arith.constant 0 : i32
    return %c0_i32, %c0_i32_0 : i32, i32
  }
  func.func @transform_5(%arg0: i32) -> (i32, i32, i32, i32) {
    %c0_i32 = arith.constant 0 : i32
    %c0_i32_0 = arith.constant 0 : i32
    %c0_i32_1 = arith.constant 0 : i32
    %c0_i32_2 = arith.constant 0 : i32
    return %arg0, %c0_i32, %c0_i32_0, %c0_i32_1 : i32, i32, i32, i32
  }
  func.func @transform_6(%arg0: i32) -> (i32, i32, i32, i32) {
    %c0_i32 = arith.constant 0 : i32
    %c0_i32_0 = arith.constant 0 : i32
    %c0_i32_1 = arith.constant 0 : i32
    %c0_i32_2 = arith.constant 0 : i32
    return %arg0, %c0_i32, %c0_i32_0, %c0_i32_1 : i32, i32, i32, i32
  }
}

</mosaic_0001>

<bundles_post_ra>
// kernel: psm_forward.1
= control target key start
LH: loop header
LB: loop body
LE: loop exit
PB: predicated region body
PF: predicated region fallthrough
CT: control target
= control target key end

     0   :  { %11 = vsyncpa [#allocation4], 0  ;;  %s2893_s21 = smov 0   ;;  %s3109_s0 = inlined_call_operand.vmem [shape: f32[2,6,192], index: 0, kind: input, shape index: {}]   ;;  %s3110_s1 = inlined_call_operand.hbm [shape: bf16[192,2304], index: 1, kind: input, shape index: {}]   ;;  %s3111_s2 = inlined_call_operand.vmem [shape: f32[3,6,384], index: 2, kind: input, shape index: {}]   ;;  %s3112_s3 = inlined_call_operand.vmem [shape: f32[3,6,384], index: 3, kind: input, shape index: {}]   ;;  %s3113_s4 = inlined_call_operand.vmem [shape: f32[6,384], index: 4, kind: input, shape index: {}]   ;;  %s3114_s5 = inlined_call_operand.vmem [shape: f32[2,3,6,384], index: 5, kind: input, shape index: {}]   ;;  %s3115_s6 = inlined_call_operand.vmem [shape: f32[2,3,6,384], index: 6, kind: output, shape index: {}]  }
   0x1 LB: > { %s2899_s22 = sadd.s32 4294967295, %s2853_s21   ;;  %p2208_p0 = scmp.ge.s32.totalorder %s2853_s21, 1  ;;  %s2853_s21 = sphi %s2893_s21, %s17_s21  }
   0x2   : > { %p184_p1 = scmp.lt.s32.totalorder %s2853_s21, 3  ;;  %s2855_s23 = smov [#allocation3]  }
   0x3   : > { %s196_s24 = sshll.u32 %s2855_s23, 4  ;;  %p3116_p3 = scmp.eq.s32.totalorder %s2899_s22, 0  ;;  %s197_s24 = int_to_ptr.vmem [resolvable:$true] %s196_s24 }
   0x4   : > { %p2903_p2 = pnand %p2208_p0, %p184_p1  ;;  %s2815_s29 = scalar_lea.hbm %s3110_s1, 27648 }
   0x5   : > { %p2816_p6 = scmp.ne.s32.totalorder %s3110_s1, %s2815_s29  ;;  %p2822_p10 = scmp.lt.u32.totalorder %s2815_s29, %s3110_s1 }
   0x6   : > { %s3118_s25 = scalar_select %p2903_p2, 1, 0 }
   0x7   : > { %p2474_p4 = pneg %p2903_p2 }
   0x9   : > { %p2912_p5 = pnand %p3116_p3, %p2474_p4 }
   0xb   : > { %p2817_p7 = pneg %p2912_p5 }
   0xd   : > { %p2818_p8 = pnand %p2817_p7, %p2816_p6 }
   0xf   : > { %p2819_p9 = pneg %p2818_p8 }
  0x11   : > { %p2824_p11 = pnand %p2822_p10, %p2819_p9 }
  0x13   : > { %2827 = shalt.err (!%p2824_p11)
}
  0x14   : > { %s2828_s10 = scalar_lea.vmem %s197_s24, 27648  ;;  %p2836_p1 = scmp.lt.s32.totalorder %s197_s24, %s197_s24 }
  0x15   : > { %p2829_p12 = scmp.ne.s32.totalorder %s197_s24, %s2828_s10  ;;  %p2837_p4 = scmp.lt.s32.totalorder %s2828_s10, %s2828_s10 }
  0x17   : > { %p2831_p13 = pnand %p2829_p12, %p2817_p7  ;;  %p2838_p3 = por %p2837_p4, %p2836_p1 }
  0x19   : > { %p2832_p0 = pneg %p2831_p13 }
  0x1b   : > { %p2839_p2 = pnand %p2838_p3, %p2832_p0 }
  0x1d   : > { %2842 = shalt.err (!%p2839_p2)
}
  0x1e   : > { %s2856_s11 = smov 1152   ;;  %s2857_s12 = smov 72  }
  0x1f   : > { %2477 = dma.hbm_to_vmem [thread:$0]  (!%p2912_p5), %s3110_s1, 27648, %s197_s24, [#allocation4], %s2856_s11, %s2856_s11, %s2857_s12  }
  0x20   : > { %p3120_p6 = scmp.ne.s32.totalorder %s3118_s25, 0 }
  0x21   : > { %p3121_p8 = scmp.eq.s32.totalorder (!%p3120_p6), %s2899_s22, 0 }
  0x22   : > { %237 = sbr.rel (%p3120_p6) target bundleno = 523 (0x20b), region = 44 }
  0x29   : > { %2848 = dma.done.wait (%p3121_p8), [#allocation4], 27648   ;;  %p3122_p7 = pmov %p3121_p8 }
  0x2a   : > { %v2491_v0 = vld [vmem:[#allocation3 + $0x4] ss:$72 sps:$4 sm:$0xff]   ;;  %v2495_v2 = vld [vmem:[#allocation3] ss:$72 sps:$4 sm:$0xff]   ;;  %v2497_v4 = vld [vmem:[#allocation3 + $0x94] ss:$72 sps:$4 sm:$0xff]  }
  0x2b   : > { %2850 = vsyncadd (%p3122_p7), [#allocation4], 4294939648  ;;  %v2493_v1 = vld [vmem:[#allocation3 + $0xc] ss:$72 sps:$4 sm:$0xff]   ;;  %1592 = vmatprep.subr.bf16.mxu0 %v2491_v0  ;;  %v2496_v3 = vld [vmem:[#allocation3 + $0x8] ss:$72 sps:$4 sm:$0xff]  }
  0x2c   : > { %1633 = vmatprep.subr.bf16.mxu1 %v2493_v1  ;;  %1593 = vmatpush1.bf16.msra.mxu0 %v2495_v2  ;;  %v2499_v5 = vld [vmem:[#allocation3 + $0x9c] ss:$72 sps:$4 sm:$0xff]   ;;  %v2501_v6 = vld [vmem:[#allocation3 + $0x90] ss:$72 sps:$4 sm:$0xff]   ;;  %v2505_v9 = vld [vmem:[#allocation3 + $0x12c] ss:$72 sps:$4 sm:$0xff]  }
  0x2d   : > { %1634 = vmatpush1.bf16.msra.mxu1 %v2496_v3  ;;  %1594 = vmatprep.subr.bf16.mxu0 %v2497_v4  ;;  %v2502_v7 = vld [vmem:[#allocation3 + $0x98] ss:$72 sps:$4 sm:$0xff]   ;;  %v2503_v8 = vld [vmem:[#allocation3 + $0x124] ss:$72 sps:$4 sm:$0xff]   ;;  %v2508_v11 = vld [vmem:[#allocation3 + $0x128] ss:$72 sps:$4 sm:$0xff]  }
  0x2e   : > { %1635 = vmatprep.subr.bf16.mxu1 %v2499_v5  ;;  %v2507_v10 = vld [vmem:[#allocation3 + $0x120] ss:$72 sps:$4 sm:$0xff]   ;;  %v2509_v12 = vld [vmem:[#allocation3 + $0x1b4] ss:$72 sps:$4 sm:$0xff]   ;;  %v2513_v14 = vld [vmem:[#allocation3 + $0x1b0] ss:$72 sps:$4 sm:$0xff]  }
  0x2f   : > { %v2511_v13 = vld [vmem:[#allocation3 + $0x1bc] ss:$72 sps:$4 sm:$0xff]   ;;  %v2514_v15 = vld [vmem:[#allocation3 + $0x1b8] ss:$72 sps:$4 sm:$0xff]   ;;  %v2517_v17 = vld [vmem:[#allocation3 + $0x24c] ss:$72 sps:$4 sm:$0xff]  }
  0x30   : > { %1595 = vmatpush1.bf16.msra.mxu0 %v2501_v6  ;;  %v2515_v16 = vld [vmem:[#allocation3 + $0x244] ss:$72 sps:$4 sm:$0xff]   ;;  %v2519_v18 = vld [vmem:[#allocation3 + $0x240] ss:$72 sps:$4 sm:$0xff]   ;;  %v2521_v20 = vld [vmem:[#allocation3 + $0x2d4] ss:$72 sps:$4 sm:$0xff]  }
  0x31   : > { %1636 = vmatpush1.bf16.msra.mxu1 %v2502_v7  ;;  %1596 = vmatprep.subr.bf16.mxu0 %v2503_v8  ;;  %v2520_v19 = vld [vmem:[#allocation3 + $0x248] ss:$72 sps:$4 sm:$0xff]   ;;  %v2523_v21 = vld [vmem:[#allocation3 + $0x2dc] ss:$72 sps:$4 sm:$0xff]   ;;  %p272_p2 = scmp.lt.s32.totalorder %s2899_s22, 1  ;;  %vm1588_vm0 = vcmask 523264  }
  0x32   : > { %1637 = vmatprep.subr.bf16.mxu1 %v2505_v9  ;;  %v2525_v22 = vld [vmem:[#allocation3 + $0x2d0] ss:$72 sps:$4 sm:$0xff]   ;;  %v2527_v24 = vld [vmem:[#allocation3 + $0x364] ss:$72 sps:$4 sm:$0xff]   ;;  %v2531_v26 = vld [vmem:[#allocation3 + $0x360] ss:$72 sps:$4 sm:$0xff]  }
  0x33   : > { %v2526_v23 = vld [vmem:[#allocation3 + $0x2d8] ss:$72 sps:$4 sm:$0xff]   ;;  %v2529_v25 = vld [vmem:[#allocation3 + $0x36c] ss:$72 sps:$4 sm:$0xff]   ;;  %s3124_s22 = smov (!%p272_p2, %s2899_s22), 1  ;;  %vm1981_vm1 = vcmask 521217  }
  0x34   : > { %1597 = vmatpush1.bf16.msra.mxu0 %v2507_v10  ;;  %v2532_v27 = vld [vmem:[#allocation3 + $0x368] ss:$72 sps:$4 sm:$0xff]   ;;  %v2533_v28 = vld [vmem:[#allocation3 + $0x3f4] ss:$72 sps:$4 sm:$0xff]   ;;  %s2468_s15 = sshll.u32 %s3124_s22, 4  ;;  %s2469_s19 = smul.u32 72, %s3124_s22 }
  0x35   : > { %1638 = vmatpush1.bf16.msra.mxu1 %v2508_v11  ;;  %1598 = vmatprep.subr.bf16.mxu0 %v2509_v12  ;;  %v2535_v29 = vld [vmem:[#allocation3 + $0x3fc] ss:$72 sps:$4 sm:$0xff]   ;;  %v2537_v30 = vld [vmem:[#allocation3 + $0x3f0] ss:$72 sps:$4 sm:$0xff]   ;;  %v2541_v33 = vld [vmem:[#allocation3 + $0x48c] ss:$72 sps:$4 sm:$0xff]   ;;  %s2946_s18 = scalar_lea.vmem %s3109_s0, %s2468_s15 }
  0x36   : > { %1639 = vmatprep.subr.bf16.mxu1 %v2511_v13  ;;  %v2538_v31 = vld [vmem:[#allocation3 + $0x3f8] ss:$72 sps:$4 sm:$0xff]   ;;  %v2539_v32 = vld [vmem:[#allocation3 + $0x484] ss:$72 sps:$4 sm:$0xff]   ;;  %v2544_v35 = vld [vmem:[#allocation3 + $0x488] ss:$72 sps:$4 sm:$0xff]   ;;  %s2995_s30 = scalar_lea.vmem %s3114_s5, %s2469_s19  ;;  %s3018_s14 = scalar_lea.vmem %s3115_s6, %s2469_s19 }
  0x37   : > { %v2543_v34 = vld [vmem:[#allocation3 + $0x480] ss:$72 sps:$4 sm:$0xff]   ;;  %v2545_v37 = vld [vmem:[#allocation3 + $0x514] ss:$72 sps:$4 sm:$0xff]   ;;  %v2549_v40 = vld [vmem:[#allocation3 + $0x510] ss:$72 sps:$4 sm:$0xff]  }
  0x38   : > { %1599 = vmatpush1.bf16.msra.mxu0 %v2513_v14  ;;  %v289_v36 = vld [vmem:[%s2946_s18 + $0x8] sm:$0x3f]  ;;  %v2553_v43 = vld [vmem:[#allocation3 + $0x5ac] ss:$72 sps:$4 sm:$0xff]   ;;  %v2556_v45 = vld [vmem:[#allocation3 + $0x5a8] ss:$72 sps:$4 sm:$0xff]  }
  0x39   : > { %1640 = vmatpush1.bf16.msra.mxu1 %v2514_v15  ;;  %1600 = vmatprep.subr.bf16.mxu0 %v2515_v16  ;;  %v2547_v38 = vld [vmem:[#allocation3 + $0x51c] ss:$72 sps:$4 sm:$0xff]   ;;  %v2949_v39 = vpack.c.bf16 %v289_v36, %v289_v36  ;;  %v2550_v41 = vld [vmem:[#allocation3 + $0x518] ss:$72 sps:$4 sm:$0xff]   ;;  %v2574_v57 = vld [vmem:[#allocation3 + $0xac] ss:$72 sps:$4 sm:$0xff]  }
  0x3a   : > { %1641 = vmatprep.subr.bf16.mxu1 %v2517_v17  ;;  %v2551_v42 = vld [vmem:[#allocation3 + $0x5a4] ss:$72 sps:$4 sm:$0xff]   ;;  %v2555_v44 = vld [vmem:[#allocation3 + $0x5a0] ss:$72 sps:$4 sm:$0xff]   ;;  %v2557_v46 = vld [vmem:[#allocation3 + $0x634] ss:$72 sps:$4 sm:$0xff]  }
  0x3b   : > { %2433 = vmatprep.mubr.msk.bf16.mxu0 %vm1588_vm0, %v2949_v39  ;;  %2434 = vmatprep.mubr.msk.bf16.mxu1 %vm1588_vm0, %v2949_v39  ;;  %v2559_v47 = vld [vmem:[#allocation3 + $0x63c] ss:$72 sps:$4 sm:$0xff]   ;;  %v2561_v48 = vld [vmem:[#allocation3 + $0x630] ss:$72 sps:$4 sm:$0xff]   ;;  %v2569_v58 = vld [vmem:[#allocation3 + $0xa0] ss:$72 sps:$4 sm:$0xff]  }
  0x3c   : > { %1601 = vmatpush1.bf16.msra.mxu0 %v2519_v18  ;;  %v2562_v49 = vld [vmem:[#allocation3 + $0x638] ss:$72 sps:$4 sm:$0xff]   ;;  %v2565_v51 = vld [vmem:[#allocation3 + $0x14] ss:$72 sps:$4 sm:$0xff]   ;;  %v2571_v56 = vld [vmem:[#allocation3 + $0xa4] ss:$72 sps:$4 sm:$0xff]  }
  0x3d   : > { %1642 = vmatpush1.bf16.msra.mxu1 %v2520_v19  ;;  %1602 = vmatprep.subr.bf16.mxu0 %v2521_v20  ;;  %v288_v50 = vld [vmem:[%s2946_s18] sm:$0x3f]  ;;  %v2572_v59 = vld [vmem:[#allocation3 + $0xa8] ss:$72 sps:$4 sm:$0xff]   ;;  %v2583_v0 = vld [vmem:[#allocation3 + $0x1c4] ss:$72 sps:$4 sm:$0xff]  }
  0x3e   : > { %1643 = vmatprep.subr.bf16.mxu1 %v2523_v21  ;;  %v2568_v52 = vld [vmem:[#allocation3 + $0x1c] ss:$72 sps:$4 sm:$0xff]   ;;  %v2956_v53 = vpack.c.bf16 %v288_v50, %v288_v50  ;;  %v2563_v54 = vld [vmem:[#allocation3 + $0x10] ss:$72 sps:$4 sm:$0xff]   ;;  %v2586_v1 = vld [vmem:[#allocation3 + $0x1cc] ss:$72 sps:$4 sm:$0xff]  }
  0x3f   : > { %v2566_v55 = vld [vmem:[#allocation3 + $0x18] ss:$72 sps:$4 sm:$0xff]   ;;  %v2577_v60 = vld [vmem:[#allocation3 + $0x134] ss:$72 sps:$4 sm:$0xff]   ;;  %v2584_v3 = vld [vmem:[#allocation3 + $0x1c8] ss:$72 sps:$4 sm:$0xff]  }
  0x40   : > { %1603 = vmatpush1.bf16.msra.mxu0 %v2525_v22  ;;  %v2580_v61 = vld [vmem:[#allocation3 + $0x13c] ss:$72 sps:$4 sm:$0xff]   ;;  %v2575_v62 = vld [vmem:[#allocation3 + $0x130] ss:$72 sps:$4 sm:$0xff]   ;;  %v2581_v2 = vld [vmem:[#allocation3 + $0x1c0] ss:$72 sps:$4 sm:$0xff]  }
  0x41   : > { %1644 = vmatpush1.bf16.msra.mxu1 %v2526_v23  ;;  %1604 = vmatprep.subr.bf16.mxu0 %v2527_v24  ;;  %v2578_v63 = vld [vmem:[#allocation3 + $0x138] ss:$72 sps:$4 sm:$0xff]   ;;  %v2589_v4 = vld [vmem:[#allocation3 + $0x254] ss:$72 sps:$4 sm:$0xff]   ;;  %v2595_v8 = vld [vmem:[#allocation3 + $0x2e4] ss:$72 sps:$4 sm:$0xff]  }
  0x42   : > { %1645 = vmatprep.subr.bf16.mxu1 %v2529_v25  ;;  %v2592_v5 = vld [vmem:[#allocation3 + $0x25c] ss:$72 sps:$4 sm:$0xff]   ;;  %v2587_v6 = vld [vmem:[#allocation3 + $0x250] ss:$72 sps:$4 sm:$0xff]   ;;  %v2598_v9 = vld [vmem:[#allocation3 + $0x2ec] ss:$72 sps:$4 sm:$0xff]  }
  0x43   : > { %v2590_v7 = vld [vmem:[#allocation3 + $0x258] ss:$72 sps:$4 sm:$0xff]   ;;  %v2596_v11 = vld [vmem:[#allocation3 + $0x2e8] ss:$72 sps:$4 sm:$0xff]   ;;  %v2601_v12 = vld [vmem:[#allocation3 + $0x374] ss:$72 sps:$4 sm:$0xff]  }
  0x44   : > { %1605 = vmatpush1.bf16.msra.mxu0 %v2531_v26  ;;  %v2593_v10 = vld [vmem:[#allocation3 + $0x2e0] ss:$72 sps:$4 sm:$0xff]   ;;  %v2604_v13 = vld [vmem:[#allocation3 + $0x37c] ss:$72 sps:$4 sm:$0xff]   ;;  %v2599_v14 = vld [vmem:[#allocation3 + $0x370] ss:$72 sps:$4 sm:$0xff]  }
  0x45   : > { %1646 = vmatpush1.bf16.msra.mxu1 %v2532_v27  ;;  %1606 = vmatprep.subr.bf16.mxu0 %v2533_v28  ;;  %v2602_v15 = vld [vmem:[#allocation3 + $0x378] ss:$72 sps:$4 sm:$0xff]   ;;  %v2607_v16 = vld [vmem:[#allocation3 + $0x404] ss:$72 sps:$4 sm:$0xff]   ;;  %v2608_v19 = vld [vmem:[#allocation3 + $0x408] ss:$72 sps:$4 sm:$0xff]  }
  0x46   : > { %1647 = vmatprep.subr.bf16.mxu1 %v2535_v29  ;;  %v2610_v17 = vld [vmem:[#allocation3 + $0x40c] ss:$72 sps:$4 sm:$0xff]   ;;  %v2605_v18 = vld [vmem:[#allocation3 + $0x400] ss:$72 sps:$4 sm:$0xff]   ;;  %v2616_v21 = vld [vmem:[#allocation3 + $0x49c] ss:$72 sps:$4 sm:$0xff]  }
  0x47   : > { %v2613_v20 = vld [vmem:[#allocation3 + $0x494] ss:$72 sps:$4 sm:$0xff]   ;;  %v2611_v22 = vld [vmem:[#allocation3 + $0x490] ss:$72 sps:$4 sm:$0xff]   ;;  %v2619_v24 = vld [vmem:[#allocation3 + $0x524] ss:$72 sps:$4 sm:$0xff]  }
  0x48   : > { %1607 = vmatpush1.bf16.msra.mxu0 %v2537_v30  ;;  %v2614_v23 = vld [vmem:[#allocation3 + $0x498] ss:$72 sps:$4 sm:$0xff]   ;;  %v2622_v25 = vld [vmem:[#allocation3 + $0x52c] ss:$72 sps:$4 sm:$0xff]   ;;  %v2620_v27 = vld [vmem:[#allocation3 + $0x528] ss:$72 sps:$4 sm:$0xff]  }
  0x49   : > { %1648 = vmatpush1.bf16.msra.mxu1 %v2538_v31  ;;  %1608 = vmatprep.subr.bf16.mxu0 %v2539_v32  ;;  %v2617_v26 = vld [vmem:[#allocation3 + $0x520] ss:$72 sps:$4 sm:$0xff]   ;;  %v2625_v28 = vld [vmem:[#allocation3 + $0x5b4] ss:$72 sps:$4 sm:$0xff]   ;;  %v2623_v30 = vld [vmem:[#allocation3 + $0x5b0] ss:$72 sps:$4 sm:$0xff]  }
  0x4a   : > { %1649 = vmatprep.subr.bf16.mxu1 %v2541_v33  ;;  %v2628_v29 = vld [vmem:[#allocation3 + $0x5bc] ss:$72 sps:$4 sm:$0xff]   ;;  %v2626_v31 = vld [vmem:[#allocation3 + $0x5b8] ss:$72 sps:$4 sm:$0xff]   ;;  %v2634_v33 = vld [vmem:[#allocation3 + $0x64c] ss:$72 sps:$4 sm:$0xff]  }
  0x4b   : > { %v2631_v32 = vld [vmem:[#allocation3 + $0x644] ss:$72 sps:$4 sm:$0xff]   ;;  %vm1992_vm2 = vcmask 1044992  }
  0x4c   : > { %1609 = vmatpush1.bf16.msra.mxu0 %v2543_v34  ;;  %v2629_v34 = vld [vmem:[#allocation3 + $0x640] ss:$72 sps:$4 sm:$0xff]   ;;  %v2637_v36 = vld [vmem:[#allocation3 + $0x24] ss:$72 sps:$4 sm:$0xff]  }
  0x4d   : > { %1650 = vmatpush1.bf16.msra.mxu1 %v2544_v35  ;;  %1610 = vmatprep.subr.bf16.mxu0 %v2545_v37  ;;  %v2632_v35 = vld [vmem:[#allocation3 + $0x648] ss:$72 sps:$4 sm:$0xff]   ;;  %v2640_v37 = vld [vmem:[#allocation3 + $0x2c] ss:$72 sps:$4 sm:$0xff]   ;;  %v2658_v50 = vld [vmem:[#allocation3 + $0x1dc] ss:$72 sps:$4 sm:$0xff]  }
  0x4e   : > { %1651 = vmatprep.subr.bf16.mxu1 %v2547_v38  ;;  %v2635_v38 = vld [vmem:[#allocation3 + $0x20] ss:$72 sps:$4 sm:$0xff]  }
  0x50   : > { %1611 = vmatpush1.bf16.msra.mxu0 %v2549_v40  ;;  %v2638_v40 = vld [vmem:[#allocation3 + $0x28] ss:$72 sps:$4 sm:$0xff]  }
  0x51   : > { %1652 = vmatpush1.bf16.msra.mxu1 %v2550_v41  ;;  %1612 = vmatprep.subr.bf16.mxu0 %v2551_v42  ;;  %v2643_v41 = vld [vmem:[#allocation3 + $0xb4] ss:$72 sps:$4 sm:$0xff]  }
  0x52   : > { %1653 = vmatprep.subr.bf16.mxu1 %v2553_v43  ;;  %v2646_v42 = vld [vmem:[#allocation3 + $0xbc] ss:$72 sps:$4 sm:$0xff]   ;;  %v2641_v43 = vld [vmem:[#allocation3 + $0xb0] ss:$72 sps:$4 sm:$0xff]  }
  0x54   : > { %1613 = vmatpush1.bf16.msra.mxu0 %v2555_v44  ;;  %v2644_v44 = vld [vmem:[#allocation3 + $0xb8] ss:$72 sps:$4 sm:$0xff]  }
  0x55   : > { %1654 = vmatpush1.bf16.msra.mxu1 %v2556_v45  ;;  %1614 = vmatprep.subr.bf16.mxu0 %v2557_v46  ;;  %v2649_v45 = vld [vmem:[#allocation3 + $0x144] ss:$72 sps:$4 sm:$0xff]  }
  0x56   : > { %1655 = vmatprep.subr.bf16.mxu1 %v2559_v47  ;;  %v2652_v46 = vld [vmem:[#allocation3 + $0x14c] ss:$72 sps:$4 sm:$0xff]   ;;  %v2647_v47 = vld [vmem:[#allocation3 + $0x140] ss:$72 sps:$4 sm:$0xff]  }
  0x58   : > { %1615 = vmatpush1.bf16.msra.mxu0 %v2561_v48  ;;  %v2650_v48 = vld [vmem:[#allocation3 + $0x148] ss:$72 sps:$4 sm:$0xff]  }
  0x59   : > { %1656 = vmatpush1.bf16.msra.mxu1 %v2562_v49  ;;  %1674 = vmatprep.subr.bf16.mxu0 %v2565_v51  ;;  %v2655_v49 = vld [vmem:[#allocation3 + $0x1d4] ss:$72 sps:$4 sm:$0xff]   ;;  %v2653_v51 = vld [vmem:[#allocation3 + $0x1d0] ss:$72 sps:$4 sm:$0xff]  }
  0x5a   : > { %1715 = vmatprep.subr.bf16.mxu1 %v2568_v52  ;;  %v2656_v52 = vld [vmem:[#allocation3 + $0x1d8] ss:$72 sps:$4 sm:$0xff]  }
  0x5b   : > { %1625 = vmatmul.mubr.bf16.vlgmr.msra.gmra.mrb[0].mxu0 %v2956_v53 }
  0x5c   : > { %1666 = vmatmul.mubr.bf16.vlgmr.msra.gmra.mrb[0].mxu1 %v2956_v53  ;;  %1675 = vmatpush1.bf16.msra.mxu0 %v2563_v54  ;;  %v2661_v54 = vld [vmem:[#allocation3 + $0x264] ss:$72 sps:$4 sm:$0xff]  }
  0x5d   : > { %1716 = vmatpush1.bf16.msra.mxu1 %v2566_v55  ;;  %1676 = vmatprep.subr.bf16.mxu0 %v2571_v56  ;;  %v2664_v55 = vld [vmem:[#allocation3 + $0x26c] ss:$72 sps:$4 sm:$0xff]   ;;  %v2659_v56 = vld [vmem:[#allocation3 + $0x260] ss:$72 sps:$4 sm:$0xff]  }
  0x5e   : > { %1717 = vmatprep.subr.bf16.mxu1 %v2574_v57  ;;  %2435 = vmatprep.mubr.msk.bf16.mxu0 %vm1588_vm0, %v2949_v39  ;;  %v2662_v57 = vld [vmem:[#allocation3 + $0x268] ss:$72 sps:$4 sm:$0xff]  }
  0x5f   : > { %2436 = vmatprep.mubr.msk.bf16.mxu1 %vm1588_vm0, %v2949_v39 }
  0x60   : > { %1677 = vmatpush1.bf16.msra.mxu0 %v2569_v58  ;;  %v2667_v58 = vld [vmem:[#allocation3 + $0x2f4] ss:$72 sps:$4 sm:$0xff]  }
  0x61   : > { %1718 = vmatpush1.bf16.msra.mxu1 %v2572_v59  ;;  %1678 = vmatprep.subr.bf16.mxu0 %v2577_v60  ;;  %v2670_v59 = vld [vmem:[#allocation3 + $0x2fc] ss:$72 sps:$4 sm:$0xff]   ;;  %v2665_v60 = vld [vmem:[#allocation3 + $0x2f0] ss:$72 sps:$4 sm:$0xff]  }
  0x62   : > { %1719 = vmatprep.subr.bf16.mxu1 %v2580_v61  ;;  %v2668_v61 = vld [vmem:[#allocation3 + $0x2f8] ss:$72 sps:$4 sm:$0xff]  }
  0x64   : > { %1679 = vmatpush1.bf16.msra.mxu0 %v2575_v62  ;;  %v2673_v62 = vld [vmem:[#allocation3 + $0x384] ss:$72 sps:$4 sm:$0xff]  }
  0x65   : > { %1720 = vmatpush1.bf16.msra.mxu1 %v2578_v63  ;;  %1680 = vmatprep.subr.bf16.mxu0 %v2583_v0  ;;  %v2676_v63 = vld [vmem:[#allocation3 + $0x38c] ss:$72 sps:$4 sm:$0xff]   ;;  %v2671_v0 = vld [vmem:[#allocation3 + $0x380] ss:$72 sps:$4 sm:$0xff]  }
  0x66   : > { %1721 = vmatprep.subr.bf16.mxu1 %v2586_v1  ;;  %v2674_v1 = vld [vmem:[#allocation3 + $0x388] ss:$72 sps:$4 sm:$0xff]  }
  0x68   : > { %1681 = vmatpush1.bf16.msra.mxu0 %v2581_v2  ;;  %v2679_v2 = vld [vmem:[#allocation3 + $0x414] ss:$72 sps:$4 sm:$0xff]  }
  0x69   : > { %1722 = vmatpush1.bf16.msra.mxu1 %v2584_v3  ;;  %1682 = vmatprep.subr.bf16.mxu0 %v2589_v4  ;;  %v2682_v3 = vld [vmem:[#allocation3 + $0x41c] ss:$72 sps:$4 sm:$0xff]   ;;  %v2677_v4 = vld [vmem:[#allocation3 + $0x410] ss:$72 sps:$4 sm:$0xff]  }
  0x6a   : > { %1723 = vmatprep.subr.bf16.mxu1 %v2592_v5  ;;  %v2680_v5 = vld [vmem:[#allocation3 + $0x418] ss:$72 sps:$4 sm:$0xff]  }
  0x6c   : > { %1683 = vmatpush1.bf16.msra.mxu0 %v2587_v6  ;;  %v2685_v6 = vld [vmem:[#allocation3 + $0x4a4] ss:$72 sps:$4 sm:$0xff]  }
  0x6d   : > { %1724 = vmatpush1.bf16.msra.mxu1 %v2590_v7  ;;  %1684 = vmatprep.subr.bf16.mxu0 %v2595_v8  ;;  %v2688_v7 = vld [vmem:[#allocation3 + $0x4ac] ss:$72 sps:$4 sm:$0xff]   ;;  %v2683_v8 = vld [vmem:[#allocation3 + $0x4a0] ss:$72 sps:$4 sm:$0xff]  }
  0x6e   : > { %1725 = vmatprep.subr.bf16.mxu1 %v2598_v9  ;;  %v2686_v9 = vld [vmem:[#allocation3 + $0x4a8] ss:$72 sps:$4 sm:$0xff]  }
  0x70   : > { %1685 = vmatpush1.bf16.msra.mxu0 %v2593_v10  ;;  %v2691_v10 = vld [vmem:[#allocation3 + $0x534] ss:$72 sps:$4 sm:$0xff]  }
  0x71   : > { %1726 = vmatpush1.bf16.msra.mxu1 %v2596_v11  ;;  %1686 = vmatprep.subr.bf16.mxu0 %v2601_v12  ;;  %v2694_v11 = vld [vmem:[#allocation3 + $0x53c] ss:$72 sps:$4 sm:$0xff]   ;;  %v2689_v12 = vld [vmem:[#allocation3 + $0x530] ss:$72 sps:$4 sm:$0xff]  }
  0x72   : > { %1727 = vmatprep.subr.bf16.mxu1 %v2604_v13  ;;  %v2692_v13 = vld [vmem:[#allocation3 + $0x538] ss:$72 sps:$4 sm:$0xff]  }
  0x74   : > { %1687 = vmatpush1.bf16.msra.mxu0 %v2599_v14  ;;  %v2697_v14 = vld [vmem:[#allocation3 + $0x5c4] ss:$72 sps:$4 sm:$0xff]  }
  0x75   : > { %1728 = vmatpush1.bf16.msra.mxu1 %v2602_v15  ;;  %1688 = vmatprep.subr.bf16.mxu0 %v2607_v16  ;;  %v2700_v15 = vld [vmem:[#allocation3 + $0x5cc] ss:$72 sps:$4 sm:$0xff]   ;;  %v2695_v16 = vld [vmem:[#allocation3 + $0x5c0] ss:$72 sps:$4 sm:$0xff]  }
  0x76   : > { %1729 = vmatprep.subr.bf16.mxu1 %v2610_v17  ;;  %v2698_v17 = vld [vmem:[#allocation3 + $0x5c8] ss:$72 sps:$4 sm:$0xff]  }
  0x78   : > { %1689 = vmatpush1.bf16.msra.mxu0 %v2605_v18  ;;  %v2703_v18 = vld [vmem:[#allocation3 + $0x654] ss:$72 sps:$4 sm:$0xff]  }
  0x79   : > { %1730 = vmatpush1.bf16.msra.mxu1 %v2608_v19  ;;  %1690 = vmatprep.subr.bf16.mxu0 %v2613_v20  ;;  %v2706_v19 = vld [vmem:[#allocation3 + $0x65c] ss:$72 sps:$4 sm:$0xff]   ;;  %v2701_v20 = vld [vmem:[#allocation3 + $0x650] ss:$72 sps:$4 sm:$0xff]  }
  0x7a   : > { %1731 = vmatprep.subr.bf16.mxu1 %v2616_v21  ;;  %v2704_v21 = vld [vmem:[#allocation3 + $0x658] ss:$72 sps:$4 sm:$0xff]  }
  0x7c   : > { %1691 = vmatpush1.bf16.msra.mxu0 %v2611_v22  ;;  %v2709_v22 = vld [vmem:[#allocation3 + $0x34] ss:$72 sps:$4 sm:$0xff]  }
  0x7d   : > { %1732 = vmatpush1.bf16.msra.mxu1 %v2614_v23  ;;  %1692 = vmatprep.subr.bf16.mxu0 %v2619_v24  ;;  %v2712_v23 = vld [vmem:[#allocation3 + $0x3c] ss:$72 sps:$4 sm:$0xff]   ;;  %v2707_v24 = vld [vmem:[#allocation3 + $0x30] ss:$72 sps:$4 sm:$0xff]  }
  0x7e   : > { %1733 = vmatprep.subr.bf16.mxu1 %v2622_v25  ;;  %v2710_v25 = vld [vmem:[#allocation3 + $0x38] ss:$72 sps:$4 sm:$0xff]  }
  0x80   : > { %1693 = vmatpush1.bf16.msra.mxu0 %v2617_v26  ;;  %v2715_v26 = vld [vmem:[#allocation3 + $0xc4] ss:$72 sps:$4 sm:$0xff]  }
  0x81   : > { %1734 = vmatpush1.bf16.msra.mxu1 %v2620_v27  ;;  %1694 = vmatprep.subr.bf16.mxu0 %v2625_v28  ;;  %v2718_v27 = vld [vmem:[#allocation3 + $0xcc] ss:$72 sps:$4 sm:$0xff]   ;;  %v2713_v28 = vld [vmem:[#allocation3 + $0xc0] ss:$72 sps:$4 sm:$0xff]  }
  0x82   : > { %1735 = vmatprep.subr.bf16.mxu1 %v2628_v29  ;;  %v2716_v29 = vld [vmem:[#allocation3 + $0xc8] ss:$72 sps:$4 sm:$0xff]  }
  0x84   : > { %1695 = vmatpush1.bf16.msra.mxu0 %v2623_v30  ;;  %v2721_v30 = vld [vmem:[#allocation3 + $0x154] ss:$72 sps:$4 sm:$0xff]  }
  0x85   : > { %1736 = vmatpush1.bf16.msra.mxu1 %v2626_v31  ;;  %1696 = vmatprep.subr.bf16.mxu0 %v2631_v32  ;;  %v2724_v31 = vld [vmem:[#allocation3 + $0x15c] ss:$72 sps:$4 sm:$0xff]   ;;  %v2719_v32 = vld [vmem:[#allocation3 + $0x150] ss:$72 sps:$4 sm:$0xff]  }
  0x86   : > { %1737 = vmatprep.subr.bf16.mxu1 %v2634_v33  ;;  %v2722_v33 = vld [vmem:[#allocation3 + $0x158] ss:$72 sps:$4 sm:$0xff]  }
  0x88   : > { %1697 = vmatpush1.bf16.msra.mxu0 %v2629_v34  ;;  %v2727_v34 = vld [vmem:[#allocation3 + $0x1e4] ss:$72 sps:$4 sm:$0xff]  }
  0x89   : > { %1738 = vmatpush1.bf16.msra.mxu1 %v2632_v35  ;;  %1756 = vmatprep.subr.bf16.mxu0 %v2637_v36  ;;  %v2730_v35 = vld [vmem:[#allocation3 + $0x1ec] ss:$72 sps:$4 sm:$0xff]   ;;  %v2725_v36 = vld [vmem:[#allocation3 + $0x1e0] ss:$72 sps:$4 sm:$0xff]  }
  0x8a   : > { %1797 = vmatprep.subr.bf16.mxu1 %v2640_v37  ;;  %v2728_v37 = vld [vmem:[#allocation3 + $0x1e8] ss:$72 sps:$4 sm:$0xff]  }
  0x8b   : > { %1707 = vmatmul.mubr.bf16.vlgmr.msra.gmra.mrb[4].mxu0 %v2956_v53 }
  0x8c   : > { %1748 = vmatmul.mubr.bf16.vlgmr.msra.gmra.mrb[4].mxu1 %v2956_v53  ;;  %1757 = vmatpush1.bf16.msra.mxu0 %v2635_v38  ;;  %v2733_v38 = vld [vmem:[#allocation3 + $0x274] ss:$72 sps:$4 sm:$0xff]  }
  0x8d   : > { %1798 = vmatpush1.bf16.msra.mxu1 %v2638_v40  ;;  %1758 = vmatprep.subr.bf16.mxu0 %v2643_v41  ;;  %v2736_v40 = vld [vmem:[#allocation3 + $0x27c] ss:$72 sps:$4 sm:$0xff]   ;;  %v2731_v41 = vld [vmem:[#allocation3 + $0x270] ss:$72 sps:$4 sm:$0xff]  }
  0x8e   : > { %1799 = vmatprep.subr.bf16.mxu1 %v2646_v42  ;;  %2437 = vmatprep.mubr.msk.bf16.mxu0 %vm1588_vm0, %v2949_v39  ;;  %v2734_v42 = vld [vmem:[#allocation3 + $0x278] ss:$72 sps:$4 sm:$0xff]  }
  0x8f   : > { %2438 = vmatprep.mubr.msk.bf16.mxu1 %vm1588_vm0, %v2949_v39 }
  0x90   : > { %1759 = vmatpush1.bf16.msra.mxu0 %v2641_v43  ;;  %v2739_v43 = vld [vmem:[#allocation3 + $0x304] ss:$72 sps:$4 sm:$0xff]  }
  0x91   : > { %1800 = vmatpush1.bf16.msra.mxu1 %v2644_v44  ;;  %1760 = vmatprep.subr.bf16.mxu0 %v2649_v45  ;;  %v2742_v44 = vld [vmem:[#allocation3 + $0x30c] ss:$72 sps:$4 sm:$0xff]   ;;  %v2737_v45 = vld [vmem:[#allocation3 + $0x300] ss:$72 sps:$4 sm:$0xff]  }
  0x92   : > { %1801 = vmatprep.subr.bf16.mxu1 %v2652_v46  ;;  %v2740_v46 = vld [vmem:[#allocation3 + $0x308] ss:$72 sps:$4 sm:$0xff]  }
  0x94   : > { %1761 = vmatpush1.bf16.msra.mxu0 %v2647_v47  ;;  %v2745_v47 = vld [vmem:[#allocation3 + $0x394] ss:$72 sps:$4 sm:$0xff]  }
  0x95   : > { %1802 = vmatpush1.bf16.msra.mxu1 %v2650_v48  ;;  %1762 = vmatprep.subr.bf16.mxu0 %v2655_v49  ;;  %v2748_v48 = vld [vmem:[#allocation3 + $0x39c] ss:$72 sps:$4 sm:$0xff]   ;;  %v2743_v49 = vld [vmem:[#allocation3 + $0x390] ss:$72 sps:$4 sm:$0xff]  }
  0x96   : > { %1803 = vmatprep.subr.bf16.mxu1 %v2658_v50  ;;  %v2746_v50 = vld [vmem:[#allocation3 + $0x398] ss:$72 sps:$4 sm:$0xff]  }
  0x98   : > { %1763 = vmatpush1.bf16.msra.mxu0 %v2653_v51  ;;  %v2751_v51 = vld [vmem:[#allocation3 + $0x424] ss:$72 sps:$4 sm:$0xff]  }
  0x99   : > { %1804 = vmatpush1.bf16.msra.mxu1 %v2656_v52  ;;  %1764 = vmatprep.subr.bf16.mxu0 %v2661_v54  ;;  %v2754_v52 = vld [vmem:[#allocation3 + $0x42c] ss:$72 sps:$4 sm:$0xff]   ;;  %v2749_v54 = vld [vmem:[#allocation3 + $0x420] ss:$72 sps:$4 sm:$0xff]  }
  0x9a   : > { %1805 = vmatprep.subr.bf16.mxu1 %v2664_v55  ;;  %v2752_v55 = vld [vmem:[#allocation3 + $0x428] ss:$72 sps:$4 sm:$0xff]  }
  0x9c   : > { %1765 = vmatpush1.bf16.msra.mxu0 %v2659_v56  ;;  %v2757_v56 = vld [vmem:[#allocation3 + $0x4b4] ss:$72 sps:$4 sm:$0xff]  }
  0x9d   : > { %1806 = vmatpush1.bf16.msra.mxu1 %v2662_v57  ;;  %1766 = vmatprep.subr.bf16.mxu0 %v2667_v58  ;;  %v2760_v57 = vld [vmem:[#allocation3 + $0x4bc] ss:$72 sps:$4 sm:$0xff]   ;;  %v2755_v58 = vld [vmem:[#allocation3 + $0x4b0] ss:$72 sps:$4 sm:$0xff]  }
  0x9e   : > { %1807 = vmatprep.subr.bf16.mxu1 %v2670_v59  ;;  %v2758_v59 = vld [vmem:[#allocation3 + $0x4b8] ss:$72 sps:$4 sm:$0xff]  }
  0xa0   : > { %1767 = vmatpush1.bf16.msra.mxu0 %v2665_v60  ;;  %v2763_v60 = vld [vmem:[#allocation3 + $0x544] ss:$72 sps:$4 sm:$0xff]  }
  0xa1   : > { %1808 = vmatpush1.bf16.msra.mxu1 %v2668_v61  ;;  %1768 = vmatprep.subr.bf16.mxu0 %v2673_v62  ;;  %v2766_v61 = vld [vmem:[#allocation3 + $0x54c] ss:$72 sps:$4 sm:$0xff]   ;;  %v2761_v62 = vld [vmem:[#allocation3 + $0x540] ss:$72 sps:$4 sm:$0xff]  }
  0xa2   : > { %1809 = vmatprep.subr.bf16.mxu1 %v2676_v63  ;;  %v2764_v63 = vld [vmem:[#allocation3 + $0x548] ss:$72 sps:$4 sm:$0xff]  }
  0xa4   : > { %1769 = vmatpush1.bf16.msra.mxu0 %v2671_v0  ;;  %v2769_v0 = vld [vmem:[#allocation3 + $0x5d4] ss:$72 sps:$4 sm:$0xff]  }
  0xa5   : > { %1810 = vmatpush1.bf16.msra.mxu1 %v2674_v1  ;;  %1770 = vmatprep.subr.bf16.mxu0 %v2679_v2  ;;  %v2772_v1 = vld [vmem:[#allocation3 + $0x5dc] ss:$72 sps:$4 sm:$0xff]   ;;  %v2767_v2 = vld [vmem:[#allocation3 + $0x5d0] ss:$72 sps:$4 sm:$0xff]  }
  0xa6   : > { %1811 = vmatprep.subr.bf16.mxu1 %v2682_v3  ;;  %v2770_v3 = vld [vmem:[#allocation3 + $0x5d8] ss:$72 sps:$4 sm:$0xff]  }
  0xa8   : > { %1771 = vmatpush1.bf16.msra.mxu0 %v2677_v4  ;;  %v2775_v4 = vld [vmem:[#allocation3 + $0x664] ss:$72 sps:$4 sm:$0xff]  }
  0xa9   : > { %1812 = vmatpush1.bf16.msra.mxu1 %v2680_v5  ;;  %1772 = vmatprep.subr.bf16.mxu0 %v2685_v6  ;;  %v2778_v5 = vld [vmem:[#allocation3 + $0x66c] ss:$72 sps:$4 sm:$0xff]   ;;  %v2773_v6 = vld [vmem:[#allocation3 + $0x660] ss:$72 sps:$4 sm:$0xff]  }
  0xaa   : > { %1813 = vmatprep.subr.bf16.mxu1 %v2688_v7  ;;  %v2776_v7 = vld [vmem:[#allocation3 + $0x668] ss:$72 sps:$4 sm:$0xff]  }
  0xac   : > { %1773 = vmatpush1.bf16.msra.mxu0 %v2683_v8  ;;  %v2781_v8 = vld [vmem:[#allocation3 + $0x44] ss:$72 sps:$4 sm:$0xff]  }
  0xad   : > { %1814 = vmatpush1.bf16.msra.mxu1 %v2686_v9  ;;  %1774 = vmatprep.subr.bf16.mxu0 %v2691_v10  ;;  %v2779_v9 = vld [vmem:[#allocation3 + $0x40] ss:$72 sps:$4 sm:$0xff]   ;;  %v2784_v10 = vld [vmem:[#allocation3 + $0xd4] ss:$72 sps:$4 sm:$0xff]  }
  0xae   : > { %1815 = vmatprep.subr.bf16.mxu1 %v2694_v11  ;;  %v2782_v11 = vld [vmem:[#allocation3 + $0xd0] ss:$72 sps:$4 sm:$0xff]  }
  0xb0   : > { %1775 = vmatpush1.bf16.msra.mxu0 %v2689_v12  ;;  %v2787_v12 = vld [vmem:[#allocation3 + $0x164] ss:$72 sps:$4 sm:$0xff]  }
  0xb1   : > { %1816 = vmatpush1.bf16.msra.mxu1 %v2692_v13  ;;  %1776 = vmatprep.subr.bf16.mxu0 %v2697_v14  ;;  %v2785_v13 = vld [vmem:[#allocation3 + $0x160] ss:$72 sps:$4 sm:$0xff]   ;;  %v2790_v14 = vld [vmem:[#allocation3 + $0x1f4] ss:$72 sps:$4 sm:$0xff]  }
  0xb2   : > { %1817 = vmatprep.subr.bf16.mxu1 %v2700_v15  ;;  %v2788_v15 = vld [vmem:[#allocation3 + $0x1f0] ss:$72 sps:$4 sm:$0xff]  }
  0xb4   : > { %1777 = vmatpush1.bf16.msra.mxu0 %v2695_v16  ;;  %v2793_v16 = vld [vmem:[#allocation3 + $0x284] ss:$72 sps:$4 sm:$0xff]  }
  0xb5   : > { %1818 = vmatpush1.bf16.msra.mxu1 %v2698_v17  ;;  %1778 = vmatprep.subr.bf16.mxu0 %v2703_v18  ;;  %v2791_v17 = vld [vmem:[#allocation3 + $0x280] ss:$72 sps:$4 sm:$0xff]   ;;  %v2796_v18 = vld [vmem:[#allocation3 + $0x314] ss:$72 sps:$4 sm:$0xff]  }
  0xb6   : > { %1819 = vmatprep.subr.bf16.mxu1 %v2706_v19  ;;  %v2794_v19 = vld [vmem:[#allocation3 + $0x310] ss:$72 sps:$4 sm:$0xff]  }
  0xb8   : > { %1779 = vmatpush1.bf16.msra.mxu0 %v2701_v20  ;;  %v2799_v20 = vld [vmem:[#allocation3 + $0x3a4] ss:$72 sps:$4 sm:$0xff]  }
  0xb9   : > { %1820 = vmatpush1.bf16.msra.mxu1 %v2704_v21  ;;  %1838 = vmatprep.subr.bf16.mxu0 %v2709_v22  ;;  %v2802_v21 = vld [vmem:[#allocation3 + $0x434] ss:$72 sps:$4 sm:$0xff]   ;;  %v2800_v22 = vld [vmem:[#allocation3 + $0x430] ss:$72 sps:$4 sm:$0xff]  }
  0xba   : > { %1879 = vmatprep.subr.bf16.mxu1 %v2712_v23  ;;  %v2805_v23 = vld [vmem:[#allocation3 + $0x4c4] ss:$72 sps:$4 sm:$0xff]  }
  0xbb   : > { %1789 = vmatmul.mubr.bf16.vlgmr.msra.gmra.mrb[8].mxu0 %v2956_v53 }
  0xbc   : > { %1830 = vmatmul.mubr.bf16.vlgmr.msra.gmra.mrb[8].mxu1 %v2956_v53  ;;  %1839 = vmatpush1.bf16.msra.mxu0 %v2707_v24  ;;  %v2803_v24 = vld [vmem:[#allocation3 + $0x4c0] ss:$72 sps:$4 sm:$0xff]  }
  0xbd   : > { %1880 = vmatpush1.bf16.msra.mxu1 %v2710_v25  ;;  %1840 = vmatprep.subr.bf16.mxu0 %v2715_v26  ;;  %v2808_v25 = vld [vmem:[#allocation3 + $0x554] ss:$72 sps:$4 sm:$0xff]   ;;  %v2806_v26 = vld [vmem:[#allocation3 + $0x550] ss:$72 sps:$4 sm:$0xff]  }
  0xbe   : > { %1881 = vmatprep.subr.bf16.mxu1 %v2718_v27  ;;  %2439 = vmatprep.mubr.msk.bf16.mxu0 %vm1588_vm0, %v2949_v39  ;;  %v2811_v27 = vld [vmem:[#allocation3 + $0x5e4] ss:$72 sps:$4 sm:$0xff]  }
  0xbf   : > { %2440 = vmatprep.mubr.msk.bf16.mxu1 %vm1588_vm0, %v2949_v39 }
  0xc0   : > { %1841 = vmatpush1.bf16.msra.mxu0 %v2713_v28  ;;  %v2809_v28 = vld [vmem:[#allocation3 + $0x5e0] ss:$72 sps:$4 sm:$0xff]  }
  0xc1   : > { %1882 = vmatpush1.bf16.msra.mxu1 %v2716_v29  ;;  %1842 = vmatprep.subr.bf16.mxu0 %v2721_v30  ;;  %v2814_v29 = vld [vmem:[#allocation3 + $0x674] ss:$72 sps:$4 sm:$0xff]   ;;  %v2812_v30 = vld [vmem:[#allocation3 + $0x670] ss:$72 sps:$4 sm:$0xff]  }
  0xc2   : > { %1883 = vmatprep.subr.bf16.mxu1 %v2724_v31 }
  0xc4   : > { %1843 = vmatpush1.bf16.msra.mxu0 %v2719_v32 }
  0xc5   : > { %1884 = vmatpush1.bf16.msra.mxu1 %v2722_v33  ;;  %1844 = vmatprep.subr.bf16.mxu0 %v2727_v34 }
  0xc6   : > { %1885 = vmatprep.subr.bf16.mxu1 %v2730_v35 }
  0xc8   : > { %1845 = vmatpush1.bf16.msra.mxu0 %v2725_v36 }
  0xc9   : > { %1886 = vmatpush1.bf16.msra.mxu1 %v2728_v37  ;;  %1846 = vmatprep.subr.bf16.mxu0 %v2733_v38 }
  0xca   : > { %1887 = vmatprep.subr.bf16.mxu1 %v2736_v40 }
  0xcc   : > { %1847 = vmatpush1.bf16.msra.mxu0 %v2731_v41 }
  0xcd   : > { %1888 = vmatpush1.bf16.msra.mxu1 %v2734_v42  ;;  %1848 = vmatprep.subr.bf16.mxu0 %v2739_v43 }
  0xce   : > { %1889 = vmatprep.subr.bf16.mxu1 %v2742_v44 }
  0xd0   : > { %1849 = vmatpush1.bf16.msra.mxu0 %v2737_v45 }
  0xd1   : > { %1890 = vmatpush1.bf16.msra.mxu1 %v2740_v46  ;;  %1850 = vmatprep.subr.bf16.mxu0 %v2745_v47 }
  0xd2   : > { %1891 = vmatprep.subr.bf16.mxu1 %v2748_v48 }
  0xd4   : > { %1851 = vmatpush1.bf16.msra.mxu0 %v2743_v49 }
  0xd5   : > { %1892 = vmatpush1.bf16.msra.mxu1 %v2746_v50  ;;  %1852 = vmatprep.subr.bf16.mxu0 %v2751_v51 }
  0xd6   : > { %1893 = vmatprep.subr.bf16.mxu1 %v2754_v52 }
  0xd8   : > { %1853 = vmatpush1.bf16.msra.mxu0 %v2749_v54 }
  0xd9   : > { %1894 = vmatpush1.bf16.msra.mxu1 %v2752_v55  ;;  %1854 = vmatprep.subr.bf16.mxu0 %v2757_v56 }
  0xda   : > { %1895 = vmatprep.subr.bf16.mxu1 %v2760_v57 }
  0xdc   : > { %1855 = vmatpush1.bf16.msra.mxu0 %v2755_v58 }
  0xdd   : > { %1896 = vmatpush1.bf16.msra.mxu1 %v2758_v59  ;;  %1856 = vmatprep.subr.bf16.mxu0 %v2763_v60 }
  0xde   : > { %1897 = vmatprep.subr.bf16.mxu1 %v2766_v61 }
  0xe0   : > { %1857 = vmatpush1.bf16.msra.mxu0 %v2761_v62 }
  0xe1   : > { %1898 = vmatpush1.bf16.msra.mxu1 %v2764_v63  ;;  %1858 = vmatprep.subr.bf16.mxu0 %v2769_v0 }
  0xe2   : > { %1899 = vmatprep.subr.bf16.mxu1 %v2772_v1 }
  0xe4   : > { %1859 = vmatpush1.bf16.msra.mxu0 %v2767_v2  ;;  %v2050_v2 = vld [vmem:[%s3111_s2] sm:$0x3f] }
  0xe5   : > { %1900 = vmatpush1.bf16.msra.mxu1 %v2770_v3  ;;  %1860 = vmatprep.subr.bf16.mxu0 %v2775_v4  ;;  %v2056_v3 = vld [vmem:[%s3112_s3] sm:$0x3f]  ;;  %v2052_v4 = vld [vmem:[%s3111_s2 + $0x10] sm:$0x3f] }
  0xe6   : > { %1901 = vmatprep.subr.bf16.mxu1 %v2778_v5 }
  0xe8   : > { %1861 = vmatpush1.bf16.msra.mxu0 %v2773_v6  ;;  %v3000_v6 = vld [vmem:[%s3113_s4] sm:$0x3f] }
  0xe9   : > { %1902 = vmatpush1.bf16.msra.mxu1 %v2776_v7  ;;  %1920 = vmatprep.subr.bf16.mxu0 %v2781_v8  ;;  %v3005_v7 = vld [vmem:[%s3113_s4 + $0x10] sm:$0x3f]  ;;  %vm2044_vm3 = vcmp.ne.f32.partialorder %v3000_v6, 0.0 }
  0xea   : > { %vm2046_vm4 = vcmp.ne.f32.partialorder %v3005_v7, 0.0 }
  0xeb   : > { %1871 = vmatmul.mubr.bf16.vlgmr.msra.gmra.mrb[12].mxu0 %v2956_v53 }
  0xec   : > { %1912 = vmatmul.mubr.bf16.vlgmr.msra.gmra.mrb[12].mxu1 %v2956_v53  ;;  %1921 = vmatpush1.bf16.msra.mxu0 %v2779_v9 }
  0xed   : > { %2441 = vmatprep.mubr.msk.bf16.mxu0 %vm1588_vm0, %v2949_v39  ;;  %1922 = vmatprep.subr.bf16.mxu0 %v2784_v10  ;;  %v2797_v39 = vld [vmem:[#allocation3 + $0x3a0] ss:$72 sps:$4 sm:$0xff]  }
  0xf0   : > { %1923 = vmatpush1.bf16.msra.mxu0 %v2782_v11  ;;  %v2058_v11 = vld [vmem:[%s3112_s3 + $0x10] sm:$0x3f] }
  0xf1   : > { %1924 = vmatprep.subr.bf16.mxu0 %v2787_v12 }
  0xf4   : > { %1925 = vmatpush1.bf16.msra.mxu0 %v2785_v13 }
  0xf5   : > { %1926 = vmatprep.subr.bf16.mxu0 %v2790_v14  ;;  %v2062_v14 = vld [vmem:[%s2995_s30] sm:$0x3f] }
  0xf8   : > { %1927 = vmatpush1.bf16.msra.mxu0 %v2788_v15  ;;  %v2064_v15 = vld [vmem:[%s2995_s30 + $0x10] sm:$0x3f] }
  0xf9   : > { %1928 = vmatprep.subr.bf16.mxu0 %v2793_v16 }
  0xfc   : > { %1929 = vmatpush1.bf16.msra.mxu0 %v2791_v17 }
  0xfd   : > { %1930 = vmatprep.subr.bf16.mxu0 %v2796_v18 }
 0x100   : > { %1931 = vmatpush1.bf16.msra.mxu0 %v2794_v19 }
 0x101   : > { %1932 = vmatprep.subr.bf16.mxu0 %v2799_v20  ;;  %v2051_v20 = vld [vmem:[%s3111_s2 + $0x8] sm:$0x3f] }
 0x104   : > { %1933 = vmatpush1.bf16.msra.mxu0 %v2797_v39  ;;  %v3032_v39 = vld [vmem:[%s3113_s4 + $0x8] sm:$0x3f] }
 0x105   : > { %1934 = vmatprep.subr.bf16.mxu0 %v2802_v21  ;;  %vm2045_vm5 = vcmp.ne.f32.partialorder %v3032_v39, 0.0 }
 0x108   : > { %1935 = vmatpush1.bf16.msra.mxu0 %v2800_v22  ;;  %v2057_v22 = vld [vmem:[%s3112_s3 + $0x8] sm:$0x3f] }
 0x109   : > { %1936 = vmatprep.subr.bf16.mxu0 %v2805_v23 }
 0x10c   : > { %1937 = vmatpush1.bf16.msra.mxu0 %v2803_v24  ;;  %v2063_v24 = vld [vmem:[%s2995_s30 + $0x8] sm:$0x3f] }
 0x10d   : > { %1938 = vmatprep.subr.bf16.mxu0 %v2808_v25 }
 0x110   : > { %1939 = vmatpush1.bf16.msra.mxu0 %v2806_v26 }
 0x111   : > { %1940 = vmatprep.subr.bf16.mxu0 %v2811_v27 }
 0x114   : > { %1941 = vmatpush1.bf16.msra.mxu0 %v2809_v28 }
 0x115   : > { %1942 = vmatprep.subr.bf16.mxu0 %v2814_v29 }
 0x118   : > { %1943 = vmatpush1.bf16.msra.mxu0 %v2812_v30 }
 0x11b   : > { %1953 = vmatmul.mubr.bf16.vlgmr.msra.gmra.mrb[16].mxu0 %v2956_v53 }
 0x12e   : > { %v1626_v31 = vpop.f32.mrb[0].mxu0 }
 0x12f   : > { %v1667_v32 = vpop.f32.mrb[0].mxu1  ;;  %1961 = vst [vmem:[#allocation2] sm:$0x3f] %v1626_v31  ;;  %v1628_v33 = vpop.f32.mrb[1].mxu0 }
 0x130   : > { %1963 = vst [vmem:[#allocation2 + $0x10] sm:$0x3f] %v1667_v32  ;;  %v1669_v34 = vpop.f32.mrb[1].mxu1  ;;  %1962 = vst [vmem:[#allocation2 + $0x8] sm:$0x3f] %v1628_v33  ;;  %v1630_v35 = vpop.f32.mrb[2].mxu0 }
 0x131   : > { %1964 = vst [vmem:[#allocation2 + $0x18] sm:$0x3f] %v1669_v34  ;;  %v1671_v36 = vpop.f32.mrb[2].mxu1  ;;  %v1631_v37 = vpop.f32.mrb[3].mxu0 }
 0x132   : > { %v1672_v38 = vpop.f32.mrb[3].mxu1 }
 0x136   : > { %v1970_v59 = vld [vmem:[#allocation2] sm:$0x3e] }
 0x137   : > { %v1971_v52 = vld [vmem:[#allocation2 + $0x8] sm:$0x3e]  ;;  %v1984_v60 = vld [vmem:[#allocation2 + $0x10] sm:$0x1f] }
 0x138   : > { %v1995_v29 = vld [vmem:[#allocation2 + $0x18] sm:$0x3e] }
 0x15e   : > { %v1708_v40 = vpop.f32.mrb[4].mxu0 }
 0x15f   : > { %v1749_v41 = vpop.f32.mrb[4].mxu1  ;;  %1965 = vst [vmem:[#allocation2 + $0x20] sm:$0x3f] %v1708_v40  ;;  %v1710_v42 = vpop.f32.mrb[5].mxu0 }
 0x160   : > { %1967 = vst [vmem:[#allocation2 + $0x30] sm:$0x3f] %v1749_v41  ;;  %v1751_v43 = vpop.f32.mrb[5].mxu1  ;;  %1966 = vst [vmem:[#allocation2 + $0x28] sm:$0x3f] %v1710_v42  ;;  %v1712_v53 = vpop.f32.mrb[6].mxu0 }
 0x161   : > { %1968 = vst [vmem:[#allocation2 + $0x38] sm:$0x3f] %v1751_v43  ;;  %v1753_v44 = vpop.f32.mrb[6].mxu1  ;;  %v1713_v45 = vpop.f32.mrb[7].mxu0 }
 0x162   : > { %v1754_v46 = vpop.f32.mrb[7].mxu1 }
 0x166   : > { %v1996_v42 = vld [vmem:[#allocation2 + $0x20] sm:$0x3e] }
 0x167   : > { %v2008_v34 = vld [vmem:[#allocation2 + $0x28] sm:$0x1f]  ;;  %v2018_v43 = vld [vmem:[#allocation2 + $0x30] sm:$0x3e] }
 0x18e   : > { %v1790_v47 = vpop.f32.mrb[8].mxu0 }
 0x18f   : > { %v1831_v48 = vpop.f32.mrb[8].mxu1  ;;  %1969 = vst [vmem:[#allocation2 + $0x40] sm:$0x3f] %v1790_v47  ;;  %v1792_v50 = vpop.f32.mrb[9].mxu0  ;;  %v2442_v47 = vld [vmem:[%s3111_s2 + $0x18] sm:$0x3f] }
 0x190   : > { %v1975_v49 = vrot.slane %v1831_v48, 7  ;;  %v1833_v51 = vpop.f32.mrb[9].mxu1  ;;  %v1974_v54 = vrot.slane %v1792_v50, 7  ;;  %v1794_v56 = vpop.f32.mrb[10].mxu0  ;;  %v1986_v1 = vrot.slane %v1831_v48, 1 }
 0x191   : > { %v1987_v55 = vrot.slane %v1833_v51, 1  ;;  %v1835_v57 = vpop.f32.mrb[10].mxu1  ;;  %v1795_v61 = vpop.f32.mrb[11].mxu0  ;;  %v2444_v48 = vld [vmem:[%s3111_s2 + $0x28] sm:$0x3f] }
 0x192   : > { %v1979_v58 = vadd.f32 %v1975_v49, %v1971_v52  ;;  %v1836_v62 = vpop.f32.mrb[11].mxu1  ;;  %v1978_v63 = vadd.f32 %v1974_v54, %v1970_v59  ;;  %v2445_v49 = vld [vmem:[%s3112_s3 + $0x18] sm:$0x3f]  ;;  %v2447_v50 = vld [vmem:[%s3112_s3 + $0x28] sm:$0x3f] }
 0x193   : > { %v1991_v0 = vadd.f32 %v1987_v55, %v1984_v60  ;;  %v2454_v51 = vld [vmem:[%s3111_s2 + $0x30] sm:$0x3f]  ;;  %v2448_v61 = vld [vmem:[%s2995_s30 + $0x18] sm:$0x3f]  ;;  %v2450_v62 = vld [vmem:[%s2995_s30 + $0x28] sm:$0x3f] }
 0x194   : > { %1982 = vst.msk [vmem:[#allocation2 + $0x8] sm:$0x3e] %vm1981_vm1, %v1979_v58  ;;  %1980 = vst [vmem:[#allocation2] sm:$0x3e] %v1978_v63  ;;  %v2457_v60 = vld [vmem:[%s3112_s3 + $0x30] sm:$0x3f] }
 0x195   : > { %1994 = vst [vmem:[#allocation2 + $0x10] sm:$0x1f] %v1991_v0 }
 0x19b   : > { %v1983_v5 = vld [vmem:[#allocation2 + $0x8] sm:$0x1f]  ;;  %v2047_v9 = vld [vmem:[#allocation2] sm:$0x3f] }
 0x19c   : > { %v1990_v8 = vadd.f32 %v1986_v1, %v1983_v5  ;;  %v2049_v10 = vld [vmem:[#allocation2 + $0x10] sm:$0x3f]  ;;  %v2053_v12 = vadd.f32 %v2050_v2, %v2047_v9 }
 0x19d   : > { %v2055_v13 = vadd.f32 %v2052_v4, %v2049_v10  ;;  %v2443_v10 = vld [vmem:[%s3111_s2 + $0x20] sm:$0x3f] }
 0x19e   : > { %1993 = vst.msk [vmem:[#allocation2 + $0x8] sm:$0x1f] %vm1992_vm2, %v1990_v8  ;;  %v2059_v16 = vmul.f32 %v2056_v3, %v2053_v12  ;;  %v2460_v3 = vld [vmem:[%s2995_s30 + $0x30] sm:$0x3f]  ;;  %v2446_v12 = vld [vmem:[%s3112_s3 + $0x20] sm:$0x3f] }
 0x19f   : > { %v2061_v17 = vmul.f32 %v2058_v11, %v2055_v13 }
 0x1a0   : > { %v2065_v18 = vsel %vm2044_vm3, %v2062_v14, %v2059_v16  ;;  %v2449_v14 = vld [vmem:[%s2995_s30 + $0x20] sm:$0x3f] }
 0x1a1   : > { %v2067_v19 = vsel %vm2046_vm4, %v2064_v15, %v2061_v17  ;;  %2068 = vst [vmem:[%s3018_s14] sm:$0x3f] %v2065_v18 }
 0x1a2   : > { %2070 = vst [vmem:[%s3018_s14 + $0x10] sm:$0x3f] %v2067_v19  ;;  %v2019_v19 = vld [vmem:[#allocation2 + $0x38] sm:$0x3e] }
 0x1a5   : > { %v2048_v21 = vld [vmem:[#allocation2 + $0x8] sm:$0x3f] }
 0x1a6   : > { %v2054_v23 = vadd.f32 %v2051_v20, %v2048_v21 }
 0x1a8   : > { %v2060_v25 = vmul.f32 %v2057_v22, %v2054_v23  ;;  %v2031_v23 = vld [vmem:[#allocation2 + $0x40] sm:$0x1f] }
 0x1aa   : > { %v2066_v26 = vsel %vm2045_vm5, %v2063_v24, %v2060_v25 }
 0x1ab   : > { %2069 = vst [vmem:[%s3018_s14 + $0x8] sm:$0x3f] %v2066_v26 }
 0x1be   : > { %v1872_v27 = vpop.f32.mrb[12].mxu0 }
 0x1bf   : > { %v1913_v28 = vpop.f32.mrb[12].mxu1  ;;  %v1999_v30 = vrot.slane %v1872_v27, 7  ;;  %v1874_v32 = vpop.f32.mrb[13].mxu0  ;;  %v2456_v27 = vld [vmem:[%s3111_s2 + $0x40] sm:$0x3f] }
 0x1c0   : > { %v2011_v31 = vrot.slane %v1913_v28, 1  ;;  %v1915_v33 = vpop.f32.mrb[13].mxu1  ;;  %v2000_v35 = vrot.slane %v1874_v32, 7  ;;  %v1876_v37 = vpop.f32.mrb[14].mxu0  ;;  %v2010_v55 = vrot.slane %v1874_v32, 1 }
 0x1c1   : > { %v2022_v36 = vrot.slane %v1915_v33, 7  ;;  %v1917_v38 = vpop.f32.mrb[14].mxu1  ;;  %v2003_v40 = vadd.f32 %v1999_v30, %v1995_v29  ;;  %v1877_v53 = vpop.f32.mrb[15].mxu0  ;;  %v2462_v33 = vld [vmem:[%s2995_s30 + $0x40] sm:$0x3f] }
 0x1c2   : > { %v2015_v41 = vadd.f32 %v2011_v31, %v2008_v34  ;;  %v1918_v44 = vpop.f32.mrb[15].mxu1  ;;  %v2004_v45 = vadd.f32 %v2000_v35, %v1996_v42  ;;  %v2459_v31 = vld [vmem:[%s3112_s3 + $0x40] sm:$0x3f]  ;;  %v2458_v38 = vld [vmem:[%s3112_s3 + $0x38] sm:$0x3f] }
 0x1c3   : > { %v2026_v46 = vadd.f32 %v2022_v36, %v2018_v43  ;;  %2005 = vst [vmem:[#allocation2 + $0x18] sm:$0x3e] %v2003_v40  ;;  %v2455_v36 = vld [vmem:[%s3111_s2 + $0x38] sm:$0x3f] }
 0x1c4   : > { %2017 = vst [vmem:[#allocation2 + $0x28] sm:$0x1f] %v2015_v41  ;;  %2006 = vst.msk [vmem:[#allocation2 + $0x20] sm:$0x3e] %vm1981_vm1, %v2004_v45  ;;  %v2461_v41 = vld [vmem:[%s2995_s30 + $0x38] sm:$0x3f] }
 0x1c5   : > { %2028 = vst [vmem:[#allocation2 + $0x30] sm:$0x3e] %v2026_v46 }
 0x1ca   : > { %v2071_v52 = vld [vmem:[#allocation2 + $0x18] sm:$0x3f] }
 0x1cb   : > { %v2073_v54 = vld [vmem:[#allocation2 + $0x28] sm:$0x3f]  ;;  %v2078_v56 = vadd.f32 %v2442_v47, %v2071_v52  ;;  %v2007_v58 = vld [vmem:[#allocation2 + $0x20] sm:$0x1f] }
 0x1cc   : > { %v2080_v57 = vadd.f32 %v2444_v48, %v2073_v54  ;;  %v2099_v59 = vld [vmem:[#allocation2 + $0x30] sm:$0x3f]  ;;  %v2014_v63 = vadd.f32 %v2010_v55, %v2007_v58 }
 0x1cd   : > { %v2106_v0 = vadd.f32 %v2454_v51, %v2099_v59  ;;  %v2085_v1 = vmul.f32 %v2445_v49, %v2078_v56 }
 0x1ce   : > { %v2087_v2 = vmul.f32 %v2447_v50, %v2080_v57  ;;  %2016 = vst.msk [vmem:[#allocation2 + $0x20] sm:$0x1f] %vm1992_vm2, %v2014_v63 }
 0x1cf   : > { %v2113_v4 = vmul.f32 %v2457_v60, %v2106_v0  ;;  %v2092_v5 = vsel %vm2044_vm3, %v2448_v61, %v2085_v1 }
 0x1d0   : > { %v2094_v8 = vsel %vm2046_vm4, %v2450_v62, %v2087_v2  ;;  %2451 = vst [vmem:[%s3018_s14 + $0x18] sm:$0x3f] %v2092_v5 }
 0x1d1   : > { %2453 = vst [vmem:[%s3018_s14 + $0x28] sm:$0x3f] %v2094_v8  ;;  %v2120_v9 = vsel %vm2044_vm3, %v2460_v3, %v2113_v4 }
 0x1d2   : > { %2463 = vst [vmem:[%s3018_s14 + $0x30] sm:$0x3f] %v2120_v9 }
 0x1d5   : > { %v2072_v11 = vld [vmem:[#allocation2 + $0x20] sm:$0x3f] }
 0x1d6   : > { %v2079_v13 = vadd.f32 %v2443_v10, %v2072_v11 }
 0x1d8   : > { %v2086_v15 = vmul.f32 %v2446_v12, %v2079_v13 }
 0x1da   : > { %v2093_v16 = vsel %vm2045_vm5, %v2449_v14, %v2086_v15 }
 0x1db   : > { %2452 = vst [vmem:[%s3018_s14 + $0x20] sm:$0x3f] %v2093_v16 }
 0x1ee   : > { %v1954_v17 = vpop.f32.mrb[16].mxu0 }
 0x1ef   : > { %v2023_v6 = vrot.slane %v1954_v17, 7  ;;  %v1956_v18 = vpop.f32.mrb[17].mxu0  ;;  %v2033_v26 = vrot.slane %v1954_v17, 1 }
 0x1f0   : > { %v2034_v20 = vrot.slane %v1956_v18, 1  ;;  %v1958_v21 = vpop.f32.mrb[18].mxu0 }
 0x1f1   : > { %v2027_v22 = vadd.f32 %v2023_v6, %v2019_v19  ;;  %v1959_v24 = vpop.f32.mrb[19].mxu0 }
 0x1f2   : > { %v2038_v25 = vadd.f32 %v2034_v20, %v2031_v23 }
 0x1f3   : > { %2029 = vst.msk [vmem:[#allocation2 + $0x38] sm:$0x3e] %vm1981_vm1, %v2027_v22 }
 0x1f4   : > { %2040 = vst [vmem:[#allocation2 + $0x40] sm:$0x1f] %v2038_v25 }
 0x1fa   : > { %v2030_v28 = vld [vmem:[#allocation2 + $0x38] sm:$0x1f] }
 0x1fb   : > { %v2037_v29 = vadd.f32 %v2033_v26, %v2030_v28  ;;  %v2101_v30 = vld [vmem:[#allocation2 + $0x40] sm:$0x3f] }
 0x1fc   : > { %v2108_v32 = vadd.f32 %v2456_v27, %v2101_v30 }
 0x1fd   : > { %2039 = vst.msk [vmem:[#allocation2 + $0x38] sm:$0x1f] %vm1992_vm2, %v2037_v29 }
 0x1fe   : > { %v2115_v34 = vmul.f32 %v2459_v31, %v2108_v32 }
 0x200   : > { %v2122_v35 = vsel %vm2046_vm4, %v2462_v33, %v2115_v34 }
 0x201   : > { %2465 = vst [vmem:[%s3018_s14 + $0x40] sm:$0x3f] %v2122_v35 }
 0x204   : > { %v2100_v37 = vld [vmem:[#allocation2 + $0x38] sm:$0x3f] }
 0x205   : > { %v2107_v40 = vadd.f32 %v2455_v36, %v2100_v37 }
 0x207   : > { %v2114_v42 = vmul.f32 %v2458_v38, %v2107_v40 }
 0x209   : > { %v2121_v43 = vsel %vm2045_vm5, %v2461_v41, %v2114_v42 }
 0x20a   : > { %2464 = vst [vmem:[%s3018_s14 + $0x38] sm:$0x3f] %v2121_v43 }
 0x20b PF: > { %s17_s21 = sadd.s32 1, %s2853_s21  }
 0x20c   : > { %p14_p3 = scmp.ge.s32.totalorder %s17_s21, 4  }
 0x20e   :  { %16 = sbr.rel (!%p14_p3) target bundleno = 1 (0x1), region = 90 }
 0x215   :  { %2148 = vsyncpa [#allocation4], 1 }
 0x216   :  { %2150 = vsyncpa [#allocation4 + $0x1], 1 }

</bundles_post_ra>
